<compile_context>
chip_gen: v5e
topology: v5e:2x2
jax: 0.10.0
libtpu: 0.0.40
codegen_flags: <defaults>
</compile_context>

<pallas_src>
import functools

import jax
import jax.numpy as jnp
from jax.experimental import pallas as pl
from jax.experimental.pallas import tpu as pltpu


def _round_up(v, m):
    return (v + m - 1) // m * m


def _make_lc2d_kernel(shifts, with_bias):
    """Kernel closure. shifts[k] = ki*W + kj (kh-major / kw-minor, torch unfold order)."""
    if with_bias:
        def kernel(x_ref, w_ref, b_ref, o_ref):
            # x_ref: (1, C, LX)  w_ref: (TO, K2*C, HWP)  b_ref: (TO, HWP)  o_ref: (1, TO, HWP)
            to, _, hwp = w_ref.shape
            c = x_ref.shape[1]
            acc3 = jnp.zeros((to, c, hwp), jnp.float32)
            for k, s in enumerate(shifts):
                xs = x_ref[0, :, pl.ds(s, hwp)]           # (C, HWP) shifted view (in-kernel "unfold")
                wk = w_ref[:, pl.ds(k * c, c), :]          # (TO, C, HWP)
                acc3 = acc3 + xs[None, :, :] * wk          # VPU mul-add, chunked over taps
            acc = jnp.sum(acc3, axis=1) + b_ref[...]       # single sublane reduce at the end
            o_ref[0] = acc.astype(o_ref.dtype)
        return kernel

    def kernel(x_ref, w_ref, o_ref):
        to, _, hwp = w_ref.shape
        c = x_ref.shape[1]
        acc3 = jnp.zeros((to, c, hwp), jnp.float32)
        for k, s in enumerate(shifts):
            xs = x_ref[0, :, pl.ds(s, hwp)]
            wk = w_ref[:, pl.ds(k * c, c), :]
            acc3 = acc3 + xs[None, :, :] * wk
        acc = jnp.sum(acc3, axis=1)
        o_ref[0] = acc.astype(o_ref.dtype)
    return kernel


def prepare_lc2d_params(weight, bias, *, kernel_size, stride, input_hw):
    """One-time (init-time) repack of the torch-layout parameters.

    weight (1, O, C, OH, OW, K*K) -> wp (O, K*K*C, HWP): rows ordered k-major/c-minor,
    values scattered onto the flattened H*W input grid (zeros at non-output lanes).
    bias (1, O, OH, OW) or None   -> bp (O, HWP) or None.
    """
    kh = kw = kernel_size
    dh = dw = stride
    h, w = input_hw
    _, o, c, oh, ow, k2 = weight.shape
    assert k2 == kh * kw
    hw = h * w
    hwp = _round_up(hw, 128)

    ii = jnp.arange(oh) * dh                               # output row -> input row
    jj = jnp.arange(ow) * dw                               # output col -> input col

    w_t = jnp.transpose(weight[0], (0, 4, 1, 2, 3))        # (O, K2, C, OH, OW)
    wfull = jnp.zeros((o, k2, c, h, w), weight.dtype)
    wfull = wfull.at[:, :, :, ii[:, None], jj[None, :]].set(w_t)
    wp = wfull.reshape(o, k2 * c, hw)
    if hwp != hw:
        wp = jnp.pad(wp, ((0, 0), (0, 0), (0, hwp - hw)))
    # TODO(synk): optionally store wp as bfloat16 on v6e/v7x to halve weight DMA
    # (keep the in-kernel accumulation in f32).

    if bias is None:
        return wp, None
    bfull = jnp.zeros((o, h, w), bias.dtype)
    bfull = bfull.at[:, ii[:, None], jj[None, :]].set(bias[0])
    bp = bfull.reshape(o, hw)
    if hwp != hw:
        bp = jnp.pad(bp, ((0, 0), (0, hwp - hw)))
    return wp, bp


@functools.partial(jax.jit, static_argnames=("kernel_size", "stride"))
def locally_connected_2d_prepared(x, wp, bp, *, kernel_size, stride):
    """x: (N, C, H, W) f32; wp/bp from prepare_lc2d_params. Returns (N, O, OH, OW)."""
    kh = kw = kernel_size
    dh = dw = stride
    n, c, h, w = x.shape
    o, ck, hwp = wp.shape
    k2 = kh * kw
    assert ck == k2 * c
    hw = h * w
    assert hwp == _round_up(hw, 128)
    oh = (h - kh) // dh + 1
    ow = (w - kw) // dw + 1

    # flat lane-dense x with enough zero tail for the largest in-kernel shift
    smax = (kh - 1) * w + (kw - 1)
    lx = _round_up(hwp + smax, 128)
    xflat = jnp.pad(x.reshape(n, c, hw), ((0, 0), (0, 0), (0, lx - hw)))

    # kh-major / kw-minor == torch unfold flatten order
    shifts = tuple(ki * w + kj for ki in range(kh) for kj in range(kw))

    # O tile: bounds the per-step weight block in VMEM and provides a parallel axis
    to = 8 if (o > 8 and o % 8 == 0) else o
    num_ob = o // to

    in_specs = [
        pl.BlockSpec((1, c, lx), lambda ob, nb: (nb, 0, 0)),       # x: resident per batch step
        pl.BlockSpec((to, ck, hwp), lambda ob, nb: (ob, 0, 0)),    # weight: tiled over O
    ]
    args = [xflat, wp]
    if bp is not None:
        in_specs.append(pl.BlockSpec((to, hwp), lambda ob, nb: (ob, 0)))
        args.append(bp)

    kernel = _make_lc2d_kernel(shifts, with_bias=bp is not None)

    out_full = pl.pallas_call(
        kernel,
        out_shape=jax.ShapeDtypeStruct((n, o, hwp), jnp.float32),
        grid_spec=pltpu.PrefetchScalarGridSpec(
            num_scalar_prefetch=0,
            grid=(num_ob, n),                                      # batch innermost
            in_specs=in_specs,
            out_specs=pl.BlockSpec((1, to, hwp), lambda ob, nb: (nb, ob, 0)),
        ),
        compiler_params=pltpu.CompilerParams(
            dimension_semantics=("parallel", "parallel"),
        ),
    )(*args)

    # lane-dense (N, O, H*W) -> (N, O, H, W) -> strided slice of the valid output grid
    out = out_full[:, :, :hw].reshape(n, o, h, w)
    if dh > 1 or dw > 1:
        out = out[:, :, ::dh, ::dw]
    return out[:, :, :oh, :ow]


def locally_connected_2d(x, weight, bias=None, *, kernel_size, stride):
    """Convenience one-shot API (prep + run). Prefer hoisting prepare_lc2d_params."""
    _, _, h, w = x.shape
    wp, bp = prepare_lc2d_params(weight, bias, kernel_size=kernel_size,
                                 stride=stride, input_hw=(h, w))
    return locally_connected_2d_prepared(x, wp, bp, kernel_size=kernel_size, stride=stride)


if __name__ == "__main__":
    # Config matches LocallyConnected2d(in_channels=4, out_channels=8,
    # output_size=14, kernel_size=3, stride=1, bias=True)
    N, C, H, W = 2, 4, 16, 16
    O, K, S = 8, 3, 1
    OH = (H - K) // S + 1
    OW = (W - K) // S + 1

    key = jax.random.PRNGKey(0)
    kx, kw_, kb = jax.random.split(key, 3)
    x = jax.random.normal(kx, (N, C, H, W), dtype=jnp.float32)
    weight = jax.random.normal(kw_, (1, O, C, OH, OW, K * K), dtype=jnp.float32)
    bias = jax.random.normal(kb, (1, O, OH, OW), dtype=jnp.float32)

    # hoisted, one-time parameter repack (would live at module-init time)
    wp, bp = prepare_lc2d_params(weight, bias, kernel_size=K, stride=S, input_hw=(H, W))

    out = locally_connected_2d_prepared(x, wp, bp, kernel_size=K, stride=S)
    out = jax.block_until_ready(out)
    out_nb = locally_connected_2d_prepared(x, wp, None, kernel_size=K, stride=S)
    out_nb = jax.block_until_ready(out_nb)

    # pure-JAX reference of the PyTorch semantics
    ii = (jnp.arange(OH) * S)[:, None] + jnp.arange(K)[None, :]          # (OH, K)
    jj = (jnp.arange(OW) * S)[:, None] + jnp.arange(K)[None, :]          # (OW, K)
    patches = x[:, :, ii[:, None, :, None], jj[None, :, None, :]]        # (N,C,OH,OW,K,K)
    patches = patches.reshape(N, C, OH, OW, K * K)
    ref_nb = jnp.einsum("ncijk,ocijk->noij", patches, weight[0])
    ref = ref_nb + bias

    assert out.shape == (N, O, OH, OW)
    assert jnp.allclose(out, ref, atol=1e-3, rtol=1e-3), float(jnp.max(jnp.abs(out - ref)))
    assert jnp.allclose(out_nb, ref_nb, atol=1e-3, rtol=1e-3), float(
        jnp.max(jnp.abs(out_nb - ref_nb))
    )

    print("KERNEL_OK")
</pallas_src>

<mosaic_0001>
module attributes {stable_mosaic.version = 11 : i64} {
  func.func @kernel(%arg0: i32, %arg1: i32, %arg2: memref<1x4x384xf32, #tpu.memory_space<vmem>>, %arg3: memref<8x36x256xf32, #tpu.memory_space<vmem>>, %arg4: memref<8x256xf32, #tpu.memory_space<vmem>>, %arg5: memref<1x8x256xf32, #tpu.memory_space<vmem>>) attributes {dimension_semantics = [#tpu.dimension_semantics<parallel>, #tpu.dimension_semantics<parallel>], iteration_bounds = array<i64: 1, 2>, scalar_prefetch = 0 : i64, scratch_operands = 0 : i64, tpu.core_type = #tpu.core_type<tc>, window_params = [{transform_indices = @transform_0, window_bounds = array<i64: 1, 4, 384>}, {transform_indices = @transform_1, window_bounds = array<i64: 8, 36, 256>}, {transform_indices = @transform_2, window_bounds = array<i64: 8, 256>}, {transform_indices = @transform_3, window_bounds = array<i64: 1, 8, 256>}]} {
    %cst = arith.constant 0.000000e+00 : f32
    %0 = vector.broadcast %cst : f32 to vector<8x4x256xf32>
    %c0 = arith.constant 0 : index
    %c0_0 = arith.constant 0 : index
    %c0_1 = arith.constant 0 : index
    %1 = vector.load %arg2[%c0, %c0_0, %c0_1] : memref<1x4x384xf32, #tpu.memory_space<vmem>>, vector<1x4x256xf32>
    %2 = vector.shape_cast %1 : vector<1x4x256xf32> to vector<4x256xf32>
    %c0_2 = arith.constant 0 : index
    %c0_3 = arith.constant 0 : index
    %c0_4 = arith.constant 0 : index
    %3 = vector.load %arg3[%c0_2, %c0_3, %c0_4] : memref<8x36x256xf32, #tpu.memory_space<vmem>>, vector<8x4x256xf32>
    %4 = vector.shape_cast %2 : vector<4x256xf32> to vector<1x4x256xf32>
    %5 = vector.broadcast %4 : vector<1x4x256xf32> to vector<8x4x256xf32>
    %6 = arith.mulf %5, %3 : vector<8x4x256xf32>
    %7 = arith.addf %0, %6 : vector<8x4x256xf32>
    %c0_5 = arith.constant 0 : index
    %c0_6 = arith.constant 0 : index
    %c1 = arith.constant 1 : index
    %8 = vector.load %arg2[%c0_5, %c0_6, %c1] : memref<1x4x384xf32, #tpu.memory_space<vmem>>, vector<1x4x256xf32>
    %9 = vector.shape_cast %8 : vector<1x4x256xf32> to vector<4x256xf32>
    %c0_7 = arith.constant 0 : index
    %c4 = arith.constant 4 : index
    %c0_8 = arith.constant 0 : index
    %10 = vector.load %arg3[%c0_7, %c4, %c0_8] : memref<8x36x256xf32, #tpu.memory_space<vmem>>, vector<8x4x256xf32>
    %11 = vector.shape_cast %9 : vector<4x256xf32> to vector<1x4x256xf32>
    %12 = vector.broadcast %11 : vector<1x4x256xf32> to vector<8x4x256xf32>
    %13 = arith.mulf %12, %10 : vector<8x4x256xf32>
    %14 = arith.addf %7, %13 : vector<8x4x256xf32>
    %c0_9 = arith.constant 0 : index
    %c0_10 = arith.constant 0 : index
    %c2 = arith.constant 2 : index
    %15 = vector.load %arg2[%c0_9, %c0_10, %c2] : memref<1x4x384xf32, #tpu.memory_space<vmem>>, vector<1x4x256xf32>
    %16 = vector.shape_cast %15 : vector<1x4x256xf32> to vector<4x256xf32>
    %c0_11 = arith.constant 0 : index
    %c8 = arith.constant 8 : index
    %c0_12 = arith.constant 0 : index
    %17 = vector.load %arg3[%c0_11, %c8, %c0_12] : memref<8x36x256xf32, #tpu.memory_space<vmem>>, vector<8x4x256xf32>
    %18 = vector.shape_cast %16 : vector<4x256xf32> to vector<1x4x256xf32>
    %19 = vector.broadcast %18 : vector<1x4x256xf32> to vector<8x4x256xf32>
    %20 = arith.mulf %19, %17 : vector<8x4x256xf32>
    %21 = arith.addf %14, %20 : vector<8x4x256xf32>
    %c0_13 = arith.constant 0 : index
    %c0_14 = arith.constant 0 : index
    %c16 = arith.constant 16 : index
    %22 = vector.load %arg2[%c0_13, %c0_14, %c16] : memref<1x4x384xf32, #tpu.memory_space<vmem>>, vector<1x4x256xf32>
    %23 = vector.shape_cast %22 : vector<1x4x256xf32> to vector<4x256xf32>
    %c0_15 = arith.constant 0 : index
    %c12 = arith.constant 12 : index
    %c0_16 = arith.constant 0 : index
    %24 = vector.load %arg3[%c0_15, %c12, %c0_16] : memref<8x36x256xf32, #tpu.memory_space<vmem>>, vector<8x4x256xf32>
    %25 = vector.shape_cast %23 : vector<4x256xf32> to vector<1x4x256xf32>
    %26 = vector.broadcast %25 : vector<1x4x256xf32> to vector<8x4x256xf32>
    %27 = arith.mulf %26, %24 : vector<8x4x256xf32>
    %28 = arith.addf %21, %27 : vector<8x4x256xf32>
    %c0_17 = arith.constant 0 : index
    %c0_18 = arith.constant 0 : index
    %c17 = arith.constant 17 : index
    %29 = vector.load %arg2[%c0_17, %c0_18, %c17] : memref<1x4x384xf32, #tpu.memory_space<vmem>>, vector<1x4x256xf32>
    %30 = vector.shape_cast %29 : vector<1x4x256xf32> to vector<4x256xf32>
    %c0_19 = arith.constant 0 : index
    %c16_20 = arith.constant 16 : index
    %c0_21 = arith.constant 0 : index
    %31 = vector.load %arg3[%c0_19, %c16_20, %c0_21] : memref<8x36x256xf32, #tpu.memory_space<vmem>>, vector<8x4x256xf32>
    %32 = vector.shape_cast %30 : vector<4x256xf32> to vector<1x4x256xf32>
    %33 = vector.broadcast %32 : vector<1x4x256xf32> to vector<8x4x256xf32>
    %34 = arith.mulf %33, %31 : vector<8x4x256xf32>
    %35 = arith.addf %28, %34 : vector<8x4x256xf32>
    %c0_22 = arith.constant 0 : index
    %c0_23 = arith.constant 0 : index
    %c18 = arith.constant 18 : index
    %36 = vector.load %arg2[%c0_22, %c0_23, %c18] : memref<1x4x384xf32, #tpu.memory_space<vmem>>, vector<1x4x256xf32>
    %37 = vector.shape_cast %36 : vector<1x4x256xf32> to vector<4x256xf32>
    %c0_24 = arith.constant 0 : index
    %c20 = arith.constant 20 : index
    %c0_25 = arith.constant 0 : index
    %38 = vector.load %arg3[%c0_24, %c20, %c0_25] : memref<8x36x256xf32, #tpu.memory_space<vmem>>, vector<8x4x256xf32>
    %39 = vector.shape_cast %37 : vector<4x256xf32> to vector<1x4x256xf32>
    %40 = vector.broadcast %39 : vector<1x4x256xf32> to vector<8x4x256xf32>
    %41 = arith.mulf %40, %38 : vector<8x4x256xf32>
    %42 = arith.addf %35, %41 : vector<8x4x256xf32>
    %c0_26 = arith.constant 0 : index
    %c0_27 = arith.constant 0 : index
    %c32 = arith.constant 32 : index
    %43 = vector.load %arg2[%c0_26, %c0_27, %c32] : memref<1x4x384xf32, #tpu.memory_space<vmem>>, vector<1x4x256xf32>
    %44 = vector.shape_cast %43 : vector<1x4x256xf32> to vector<4x256xf32>
    %c0_28 = arith.constant 0 : index
    %c24 = arith.constant 24 : index
    %c0_29 = arith.constant 0 : index
    %45 = vector.load %arg3[%c0_28, %c24, %c0_29] : memref<8x36x256xf32, #tpu.memory_space<vmem>>, vector<8x4x256xf32>
    %46 = vector.shape_cast %44 : vector<4x256xf32> to vector<1x4x256xf32>
    %47 = vector.broadcast %46 : vector<1x4x256xf32> to vector<8x4x256xf32>
    %48 = arith.mulf %47, %45 : vector<8x4x256xf32>
    %49 = arith.addf %42, %48 : vector<8x4x256xf32>
    %c0_30 = arith.constant 0 : index
    %c0_31 = arith.constant 0 : index
    %c33 = arith.constant 33 : index
    %50 = vector.load %arg2[%c0_30, %c0_31, %c33] : memref<1x4x384xf32, #tpu.memory_space<vmem>>, vector<1x4x256xf32>
    %51 = vector.shape_cast %50 : vector<1x4x256xf32> to vector<4x256xf32>
    %c0_32 = arith.constant 0 : index
    %c28 = arith.constant 28 : index
    %c0_33 = arith.constant 0 : index
    %52 = vector.load %arg3[%c0_32, %c28, %c0_33] : memref<8x36x256xf32, #tpu.memory_space<vmem>>, vector<8x4x256xf32>
    %53 = vector.shape_cast %51 : vector<4x256xf32> to vector<1x4x256xf32>
    %54 = vector.broadcast %53 : vector<1x4x256xf32> to vector<8x4x256xf32>
    %55 = arith.mulf %54, %52 : vector<8x4x256xf32>
    %56 = arith.addf %49, %55 : vector<8x4x256xf32>
    %c0_34 = arith.constant 0 : index
    %c0_35 = arith.constant 0 : index
    %c34 = arith.constant 34 : index
    %57 = vector.load %arg2[%c0_34, %c0_35, %c34] : memref<1x4x384xf32, #tpu.memory_space<vmem>>, vector<1x4x256xf32>
    %58 = vector.shape_cast %57 : vector<1x4x256xf32> to vector<4x256xf32>
    %c0_36 = arith.constant 0 : index
    %c32_37 = arith.constant 32 : index
    %c0_38 = arith.constant 0 : index
    %59 = vector.load %arg3[%c0_36, %c32_37, %c0_38] : memref<8x36x256xf32, #tpu.memory_space<vmem>>, vector<8x4x256xf32>
    %60 = vector.shape_cast %58 : vector<4x256xf32> to vector<1x4x256xf32>
    %61 = vector.broadcast %60 : vector<1x4x256xf32> to vector<8x4x256xf32>
    %62 = arith.mulf %61, %59 : vector<8x4x256xf32>
    %63 = arith.addf %56, %62 : vector<8x4x256xf32>
    %cst_39 = arith.constant dense<0.000000e+00> : vector<8x256xf32>
    %64 = vector.multi_reduction <add>, %63, %cst_39 [1] : vector<8x4x256xf32> to vector<8x256xf32>
    %c0_40 = arith.constant 0 : index
    %c0_41 = arith.constant 0 : index
    %65 = vector.load %arg4[%c0_40, %c0_41] : memref<8x256xf32, #tpu.memory_space<vmem>>, vector<8x256xf32>
    %66 = arith.addf %64, %65 : vector<8x256xf32>
    %c0_42 = arith.constant 0 : index
    %c0_43 = arith.constant 0 : index
    %c0_44 = arith.constant 0 : index
    %67 = vector.load %arg5[%c0_42, %c0_43, %c0_44] : memref<1x8x256xf32, #tpu.memory_space<vmem>>, vector<1x8x256xf32>
    %68 = vector.shape_cast %67 : vector<1x8x256xf32> to vector<8x256xf32>
    %69 = vector.shape_cast %66 : vector<8x256xf32> to vector<1x8x256xf32>
    tpu.vector_store %arg5[%c0_42, %c0_43, %c0_44], %69 {strides = array<i32>} : memref<1x8x256xf32, #tpu.memory_space<vmem>>, vector<1x8x256xf32>,
    return
  }
  func.func @transform_0(%arg0: i32, %arg1: i32) -> (i32, i32, i32) {
    %c0_i32 = arith.constant 0 : i32
    %c0_i32_0 = arith.constant 0 : i32
    %c0_i32_1 = arith.constant 0 : i32
    return %arg1, %c0_i32, %c0_i32_0 : i32, i32, i32
  }
  func.func @transform_1(%arg0: i32, %arg1: i32) -> (i32, i32, i32) {
    %c0_i32 = arith.constant 0 : i32
    %c0_i32_0 = arith.constant 0 : i32
    %c0_i32_1 = arith.constant 0 : i32
    return %arg0, %c0_i32, %c0_i32_0 : i32, i32, i32
  }
  func.func @transform_2(%arg0: i32, %arg1: i32) -> (i32, i32) {
    %c0_i32 = arith.constant 0 : i32
    %c0_i32_0 = arith.constant 0 : i32
    return %arg0, %c0_i32 : i32, i32
  }
  func.func @transform_3(%arg0: i32, %arg1: i32) -> (i32, i32, i32) {
    %c0_i32 = arith.constant 0 : i32
    %c0_i32_0 = arith.constant 0 : i32
    return %arg1, %arg0, %c0_i32 : i32, i32, i32
  }
}

</mosaic_0001>

<bundles_post_ra>
// kernel: locally_connected_2d_prepared.1
= control target key start
LH: loop header
LB: loop body
LE: loop exit
PB: predicated region body
PF: predicated region fallthrough
CT: control target
= control target key end

     0   :  { %s2547_s12 = smov 0   ;;  %s2549_s13 = smov 0   ;;  %s3966_s0 = inlined_call_operand.vmem [shape: f32[2,4,384], index: 0, kind: input, shape index: {}]   ;;  %s3967_s1 = inlined_call_operand.vmem [shape: f32[8,36,256], index: 1, kind: input, shape index: {}]   ;;  %s3968_s2 = inlined_call_operand.vmem [shape: f32[8,256], index: 2, kind: input, shape index: {}]   ;;  %s3969_s3 = inlined_call_operand.vmem [shape: f32[2,8,256], index: 3, kind: output, shape index: {}]  }
   0x1   :  { %s2551_s14 = smov 0  }
   0x2 LB: > { %s22_s15 = sadd.s32 1, %s2505_s13  ;;  %p2438_p0 = scmp.ge.s32.totalorder %s2509_s14, 1  ;;  %s2509_s14 = sphi %s2551_s14, %s13_s14   ;;  %s2505_s13 = sphi %s2549_s13, %s3971_s13   ;;  %s2501_s12 = sphi %s2547_s12, %s3970_s12  }
   0x3   : > { %p23_p1 = scmp.ge.s32.totalorder %s22_s15, 2  ;;  %p173_p2 = scmp.lt.s32.totalorder %s2509_s14, 3 }
   0x5   : > { %s3973_s15 = smov (%p23_p1, %s22_s15), 0  ;;  %p174_p3 = pnand %p2438_p0, %p173_p2 }
   0x6   : > { %s2511_s11 = smov (!%p174_p3), 1   ;;  %s2512_s22 = smov (!%p174_p3), 2  }
   0x7   : > { %177 = sbr.rel (%p174_p3) target bundleno = 1200 (0x4b0), region = 32  ;;  %s2513_s18 = smov (!%p174_p3), 16  }
   0x8   : > { %p212_p4 = scmp.lt.s32.totalorder (!%p174_p3), %s2501_s12, 1  ;;  %s2514_s21 = smov (!%p174_p3), 126  }
   0x9   : > { %s2516_s30 = smov (!%p174_p3), 112   ;;  %s2517_s19 = smov (!%p174_p3), 17  }
   0xa   : > { %s2519_s4 = smov (!%p174_p3), 18   ;;  %s2524_s29 = smov (!%p174_p3), 34  }
   0xb   : > { %s2526_s9 = smov (!%p174_p3), 94  }
   0xc   : > { %v318_v0 = vld [vmem:[%s3967_s1 + $0xa0] sm:$0xf0]  ;;  %v319_v1 = vld [vmem:[%s3967_s1 + $0xa8] sm:$0xf0]  ;;  %v320_v4 = vld [vmem:[%s3967_s1 + $0xf0] sm:$0xf0] }
   0xd   : > { %354 = vst.sshfl [vmem:[#allocation1 + $0x20] sm:$0xff pattern:$0x75316420] %v318_v0  ;;  %v314_v2 = vld [vmem:[%s3967_s1] sm:$0xf0]  ;;  %vm279_vm0 = vcmask 1043456  }
   0xe   : > { %355 = vst.sshfl [vmem:[#allocation1 + $0x28] sm:$0xff pattern:$0x75316420] %v319_v1  ;;  %v315_v3 = vld [vmem:[%s3967_s1 + $0x8] sm:$0xf0]  ;;  %s3975_s12 = smov (!%p212_p4, %s2501_s12), 1 }
   0xf   : > { %346 = vst.sshfl [vmem:[#allocation1] sm:$0xff pattern:$0x75316420] %v314_v2  ;;  %v321_v5 = vld [vmem:[%s3967_s1 + $0xf8] sm:$0xf0]  ;;  %s2445_s16 = smul.u32 12, %s3975_s12 }
  0x10   : > { %347 = vst.sshfl [vmem:[#allocation1 + $0x8] sm:$0xff pattern:$0x75316420] %v315_v3  ;;  %v316_v6 = vld [vmem:[%s3967_s1 + $0x50] sm:$0xf0]  ;;  %vm610_vm1 = vcmask 15360  }
  0x11   : > { %358 = vst.sshfl [vmem:[#allocation1 + $0x30] sm:$0xff pattern:$0x75316420] %v320_v4  ;;  %v317_v7 = vld [vmem:[%s3967_s1 + $0x58] sm:$0xf0]  ;;  %s2737_s20 = scalar_lea.vmem %s3966_s0, %s2445_s16  ;;  %vm398_vm2 = vcmask 7168  }
  0x12   : > { %359 = vst.sshfl [vmem:[#allocation1 + $0x38] sm:$0xff pattern:$0x75316420] %v321_v5  ;;  %v328_v9 = vld [vmem:[%s3967_s1 + $0x230] sm:$0xf0]  ;;  %vm832_vm3 = vcmask 130048  }
  0x13   : > { %350 = vst.sshfl [vmem:[#allocation1 + $0x10] sm:$0xff pattern:$0x75316420] %v316_v6  ;;  %v326_v10 = vld [vmem:[%s3967_s1 + $0x1e0] sm:$0xf0]  ;;  %vm504_vm4 = vcmask 1039360  }
  0x14   : > { %351 = vst.sshfl [vmem:[#allocation1 + $0x18] sm:$0xff pattern:$0x75316420] %v317_v7  ;;  %v327_v11 = vld [vmem:[%s3967_s1 + $0x1e8] sm:$0xf0]  ;;  %vm716_vm5 = vcmask 1031168  }
  0x15   : > { %v357_v8 = vld [vmem:[#allocation1 + $0x21] ss:$2 sm:$0xff]  ;;  %v329_v12 = vld [vmem:[%s3967_s1 + $0x238] sm:$0xf0]  ;;  %v324_v18 = vld [vmem:[%s3967_s1 + $0x190] sm:$0xf0] }
  0x16   : > { %378 = vrot.lane.b32.xlu1 %v357_v8, %s2511_s11  ;;  %368 = vst.sshfl [vmem:[#allocation1 + $0x20] sm:$0xff pattern:$0x75316420] %v326_v10  ;;  %v322_v13 = vld [vmem:[%s3967_s1 + $0x140] sm:$0xf0]  ;;  %vm938_vm6 = vcmask 916480  }
  0x17   : > { %v349_v14 = vld [vmem:[#allocation1 + $0x1] ss:$2 sm:$0xff]  ;;  %369 = vst.sshfl [vmem:[#allocation1 + $0x28] sm:$0xff pattern:$0x75316420] %v327_v11  ;;  %vm1044_vm7 = vcmask 138240  }
  0x18   : > { %374 = vrot.lane.b32.xlu0 %v349_v14, %s2511_s11  ;;  %v323_v15 = vld [vmem:[%s3967_s1 + $0x148] sm:$0xf0]  ;;  %362 = vst.sshfl [vmem:[#allocation1] sm:$0xff pattern:$0x75316420] %v322_v13  ;;  %vm1150_vm8 = vcmask 908288  }
  0x19   : > { %v361_v16 = vld [vmem:[#allocation1 + $0x31] ss:$2 sm:$0xff]  ;;  %363 = vst.sshfl [vmem:[#allocation1 + $0x8] sm:$0xff pattern:$0x75316420] %v323_v15  ;;  %vm1266_vm9 = vcmask 146432  }
  0x1a   : > { %371 = vst.sshfl [vmem:[#allocation1 + $0x30] sm:$0xff pattern:$0x75316420] %v328_v9  ;;  %v325_v19 = vld [vmem:[%s3967_s1 + $0x198] sm:$0xf0]  ;;  %s2520_s16 = smov 110  }
  0x1b   : > { %372 = vst.sshfl [vmem:[#allocation1 + $0x38] sm:$0xff pattern:$0x75316420] %v329_v12  ;;  %v353_v17 = vld [vmem:[#allocation1 + $0x11] ss:$2 sm:$0xff]  ;;  %vm1372_vm10 = vcmask 900096  }
  0x1c   : > { %365 = vst.sshfl [vmem:[#allocation1 + $0x10] sm:$0xff pattern:$0x75316420] %v324_v18  ;;  %v541_v22 = vld [vmem:[%s3967_s1 + $0x68] sm:$0xf]  ;;  %vm1478_vm11 = vcmask 261120  }
  0x1d   : > { %366 = vst.sshfl [vmem:[#allocation1 + $0x18] sm:$0xff pattern:$0x75316420] %v325_v19  ;;  %v539_v24 = vld [vmem:[%s3967_s1 + $0x18] sm:$0xf]  ;;  %v571_v28 = vrot.slane %v541_v22, 4 }
  0x1e   : > { %380 = vrot.lane.b32.xlu1 %v361_v16, %s2511_s11  ;;  %v370_v23 = vld [vmem:[#allocation1 + $0x21] ss:$2 sm:$0xff]  ;;  %v543_v26 = vld [vmem:[%s3967_s1 + $0xb8] sm:$0xf]  ;;  %v570_v31 = vrot.slane %v539_v24, 4  ;;  %vm1584_vm12 = vcmask 785408  }
  0x1f   : > { %v750_v27 = vld [vmem:[%s3967_s1 + $0x60] sm:$0xf0]  ;;  %v751_v29 = vld [vmem:[%s3967_s1 + $0x68] sm:$0xf0]  ;;  %v540_v30 = vld [vmem:[%s3967_s1 + $0x60] sm:$0xf] }
  0x20   : > { %376 = vrot.lane.b32.xlu0 %v353_v17, %s2511_s11  ;;  %v364_v20 = vld [vmem:[#allocation1 + $0x1] ss:$2 sm:$0xff]  ;;  %v538_v32 = vld [vmem:[%s3967_s1 + $0x10] sm:$0xf]  ;;  %v572_v33 = vrot.slane %v543_v26, 4  ;;  %v579_v34 = vsel %vm279_vm0, %v540_v30, %v571_v28  ;;  %vm1700_vm13 = vcmask 269312  }
  0x21   : > { %382 = vrot.lane.b32.xlu2 %v364_v20, %s2511_s11  ;;  %v542_v35 = vld [vmem:[%s3967_s1 + $0xb0] sm:$0xf]  ;;  %v547_v36 = vld [vmem:[%s3967_s1 + $0x158] sm:$0xf]  ;;  %v578_v37 = vsel %vm279_vm0, %v538_v32, %v570_v31  ;;  %v545_v38 = vld [vmem:[%s3967_s1 + $0x108] sm:$0xf] }
  0x22   : > { %v373_v21 = vld [vmem:[#allocation1 + $0x31] ss:$2 sm:$0xff]  ;;  %v580_v39 = vsel %vm279_vm0, %v542_v35, %v572_v33  ;;  %v574_v40 = vrot.slane %v547_v36, 4  ;;  %v549_v41 = vld [vmem:[%s3967_s1 + $0x1a8] sm:$0xf]  ;;  %v573_v43 = vrot.slane %v545_v38, 4 }
  0x23   : > { %v546_v42 = vld [vmem:[%s3967_s1 + $0x150] sm:$0xf]  ;;  %v544_v44 = vld [vmem:[%s3967_s1 + $0x100] sm:$0xf]  ;;  %v575_v45 = vrot.slane %v549_v41, 4  ;;  %vm1912_vm14 = vcmask 277504  }
  0x24   : > { %v367_v25 = vld [vmem:[#allocation1 + $0x11] ss:$2 sm:$0xff]  ;;  %v582_v46 = vsel %vm279_vm0, %v546_v42, %v574_v40  ;;  %v548_v47 = vld [vmem:[%s3967_s1 + $0x1a0] sm:$0xf]  ;;  %v553_v48 = vld [vmem:[%s3967_s1 + $0x248] sm:$0xf]  ;;  %v581_v49 = vsel %vm279_vm0, %v544_v44, %v573_v43 }
  0x25   : > { %784 = vst.sshfl [vmem:[#allocation1 + $0x10] sm:$0xff pattern:$0x75316420] %v750_v27  ;;  %v551_v50 = vld [vmem:[%s3967_s1 + $0x1f8] sm:$0xf]  ;;  %v583_v51 = vsel %vm279_vm0, %v548_v47, %v575_v45  ;;  %v577_v52 = vrot.slane %v553_v48, 4 }
  0x26   : > { %388 = vrot.lane.b32.xlu1 %v373_v21, %s2511_s11  ;;  %785 = vst.sshfl [vmem:[#allocation1 + $0x18] sm:$0xff pattern:$0x75316420] %v751_v29  ;;  %v552_v53 = vld [vmem:[%s3967_s1 + $0x240] sm:$0xf]  ;;  %v576_v54 = vrot.slane %v551_v50, 4 }
  0x27   : > { %v550_v55 = vld [vmem:[%s3967_s1 + $0x1f0] sm:$0xf]  ;;  %v585_v56 = vsel %vm279_vm0, %v552_v53, %v577_v52  ;;  %v748_v59 = vld [vmem:[%s3967_s1 + $0x10] sm:$0xf0]  ;;  %v749_v60 = vld [vmem:[%s3967_s1 + $0x18] sm:$0xf0] }
  0x28   : > { %386 = vrot.lane.b32.xlu0 %v370_v23, %s2511_s11  ;;  %v584_v57 = vsel %vm279_vm0, %v550_v55, %v576_v54  ;;  %780 = vst.sshfl [vmem:[#allocation1] sm:$0xff pattern:$0x75316420] %v748_v59  ;;  %v756_v61 = vld [vmem:[%s3967_s1 + $0x150] sm:$0xf0]  ;;  %v2757_v31 = vld [vmem:[%s2737_s20] sm:$0xff] }
  0x29   : > { %384 = vrot.lane.b32.xlu2 %v367_v25, %s2511_s11  ;;  %781 = vst.sshfl [vmem:[#allocation1 + $0x8] sm:$0xff pattern:$0x75316420] %v749_v60  ;;  %v757_v62 = vld [vmem:[%s3967_s1 + $0x158] sm:$0xf0]  ;;  %s2515_s11 = smov 127  }
  0x2a   : > { %v752_v0 = vld [vmem:[%s3967_s1 + $0xb0] sm:$0xf0]  ;;  %v753_v1 = vld [vmem:[%s3967_s1 + $0xb8] sm:$0xf0]  ;;  %v754_v2 = vld [vmem:[%s3967_s1 + $0x100] sm:$0xf0] }
  0x2b   : > { %788 = vst.sshfl [vmem:[#allocation1 + $0x20] sm:$0xff pattern:$0x75316420] %v752_v0  ;;  %v755_v4 = vld [vmem:[%s3967_s1 + $0x108] sm:$0xf0]  ;;  %vm1806_vm15 = vcmask 777216  }
  0x2c   : > { %789 = vst.sshfl [vmem:[#allocation1 + $0x28] sm:$0xff pattern:$0x75316420] %v753_v1  ;;  %v758_v5 = vld [vmem:[%s3967_s1 + $0x1a0] sm:$0xf0] }
  0x2d   : > { %v787_v58 = vld [vmem:[#allocation1 + $0x11] ss:$2 sm:$0xff]  ;;  %792 = vst.sshfl [vmem:[#allocation1 + $0x30] sm:$0xff pattern:$0x75316420] %v754_v2 }
  0x2e   : > { %588 = vrot.lane.b32.xlu1 %v579_v34, %s2512_s22  ;;  %793 = vst.sshfl [vmem:[#allocation1 + $0x38] sm:$0xff pattern:$0x75316420] %v755_v4  ;;  %v759_v6 = vld [vmem:[%s3967_s1 + $0x1a8] sm:$0xf0] }
  0x2f   : > { %799 = vst.sshfl [vmem:[#allocation1 + $0x10] sm:$0xff pattern:$0x75316420] %v758_v5  ;;  %v2740_v15 = vld [vmem:[%s2737_s20 + $0x8] sm:$0xf] }
  0x30   : > { %586 = vrot.lane.b32.xlu0 %v578_v37, %s2512_s22  ;;  %v783_v63 = vld [vmem:[#allocation1 + $0x1] ss:$2 sm:$0xff]  ;;  %800 = vst.sshfl [vmem:[#allocation1 + $0x18] sm:$0xff pattern:$0x75316420] %v759_v6 }
  0x31   : > { %590 = vrot.lane.b32.xlu2 %v580_v39, %s2512_s22  ;;  %796 = vst.sshfl [vmem:[#allocation1] sm:$0xff pattern:$0x75316420] %v756_v61  ;;  %v2783_v54 = vld [vmem:[%s2737_s20 + $0x8] sm:$0xf] }
  0x32   : > { %797 = vst.sshfl [vmem:[#allocation1 + $0x8] sm:$0xff pattern:$0x75316420] %v757_v62  ;;  %v763_v59 = vld [vmem:[%s3967_s1 + $0x248] sm:$0xf0] }
  0x33   : > { %v791_v7 = vld [vmem:[#allocation1 + $0x21] ss:$2 sm:$0xff] }
  0x35   : > { %v795_v8 = vld [vmem:[#allocation1 + $0x31] ss:$2 sm:$0xff] }
  0x36   : > { %594 = vrot.lane.b32.xlu1 %v582_v46, %s2512_s22  ;;  %806 = vst.sshfl [vmem:[#allocation1 + $0x38] sm:$0xff pattern:$0x75316420] %v763_v59 }
  0x37   : > { %v801_v10 = vld [vmem:[#allocation1 + $0x11] ss:$2 sm:$0xff] }
  0x38   : > { %592 = vrot.lane.b32.xlu0 %v581_v49, %s2512_s22 }
  0x39   : > { %596 = vrot.lane.b32.xlu2 %v583_v51, %s2512_s22  ;;  %v798_v3 = vld [vmem:[#allocation1 + $0x1] ss:$2 sm:$0xff] }
  0x3e   : > { %600 = vrot.lane.b32.xlu1 %v585_v56, %s2512_s22 }
  0x40   : > { %598 = vrot.lane.b32.xlu0 %v584_v57, %s2512_s22  ;;  %s2521_s22 = smov 32  }
  0x41   : > { %812 = vrot.lane.b32.xlu2 %v791_v7, %s2513_s18 }
  0x46   : > { %810 = vrot.lane.b32.xlu1 %v787_v58, %s2513_s18  ;;  %v762_v58 = vld [vmem:[%s3967_s1 + $0x240] sm:$0xf0] }
  0x47   : > { %805 = vst.sshfl [vmem:[#allocation1 + $0x30] sm:$0xff pattern:$0x75316420] %v762_v58 }
  0x48   : > { %808 = vrot.lane.b32.xlu0 %v783_v63, %s2513_s18 }
  0x49   : > { %818 = vrot.lane.b32.xlu2 %v801_v10, %s2513_s18  ;;  %v760_v10 = vld [vmem:[%s3967_s1 + $0x1f0] sm:$0xf0] }
  0x4a   : > { %802 = vst.sshfl [vmem:[#allocation1 + $0x20] sm:$0xff pattern:$0x75316420] %v760_v10 }
  0x4e   : > { %816 = vrot.lane.b32.xlu1 %v798_v3, %s2513_s18 }
  0x50   : > { %814 = vrot.lane.b32.xlu0 %v795_v8, %s2513_s18 }
  0x7b   : > { %v2720_v9 = vpop.permute.xlu2 %382 }
  0x7c   : > { %v394_v7 = vrot.slane %v2720_v9, 4 }
  0x83   : > { %v2727_v11 = vpop.permute.xlu2 %384 }
  0x84   : > { %v395_v4 = vrot.slane %v2727_v11, 4 }
  0x86   : > { %v434_v6 = vmul.f32 %v395_v4, %v2783_v54 }
  0x88   : > { %v2730_v12 = vpop.permute.xlu1 %378 }
  0x89   : > { %v392_v51 = vrot.slane %v2730_v12, 4 }
  0x8a   : > { %v2732_v13 = vpop.permute.xlu0 %374 }
  0x8b   : > { %v591_v14 = vpop.permute.xlu2 %590  ;;  %v428_v55 = vmul.f32 %v392_v51, %v2783_v54  ;;  %v390_v3 = vrot.slane %v2732_v13, 4 }
  0x8c   : > { %v604_v16 = vrot.slane %v591_v14, 4 }
  0x8d   : > { %v424_v8 = vmul.f32 %v390_v3, %v2783_v54 }
  0x8e   : > { %v640_v17 = vmul.f32 %v604_v16, %v2740_v15  ;;  %v613_v52 = vsel %vm610_vm1, %v604_v16, %v591_v14  ;;  %v761_v14 = vld [vmem:[%s3967_s1 + $0x1f8] sm:$0xf0]  ;;  %v403_v16 = vsel %vm398_vm2, %v394_v7, %v2720_v9 }
  0x8f   : > { %v639_v57 = vmul.f32 %v613_v52, %v2757_v31  ;;  %803 = vst.sshfl [vmem:[#allocation1 + $0x28] sm:$0xff pattern:$0x75316420] %v761_v14 }
  0x90   : > { %v2743_v18 = vpop.permute.xlu1 %380  ;;  %677 = vrot.lane.b32.xlu1 %v640_v17, %s2514_s21 }
  0x91   : > { %v393_v17 = vrot.slane %v2743_v18, 4 }
  0x92   : > { %v2746_v19 = vpop.permute.xlu0 %376 }
  0x93   : > { %v597_v20 = vpop.permute.xlu2 %596  ;;  %v391_v56 = vrot.slane %v2746_v19, 4 }
  0x94   : > { %v607_v21 = vrot.slane %v597_v20, 4 }
  0x95   : > { %v400_v61 = vsel %vm398_vm2, %v391_v56, %v2746_v19  ;;  %v426_v19 = vmul.f32 %v391_v56, %v2783_v54 }
  0x96   : > { %v646_v22 = vmul.f32 %v607_v21, %v2740_v15  ;;  %v616_v62 = vsel %vm610_vm1, %v607_v21, %v597_v20  ;;  %v425_v0 = vmul.f32 %v2757_v31, %v400_v61  ;;  %v431_v20 = vmul.f32 %v2757_v31, %v403_v16 }
  0x97   : > { %v645_v1 = vmul.f32 %v616_v62, %v2757_v31 }
  0x98   : > { %v2749_v23 = vpop.permute.xlu1 %388  ;;  %689 = vrot.lane.b32.xlu1 %v646_v22, %s2514_s21  ;;  %v430_v22 = vmul.f32 %v393_v17, %v2783_v54 }
  0x99   : > { %v397_v21 = vrot.slane %v2749_v23, 4 }
  0x9a   : > { %v2752_v24 = vpop.permute.xlu0 %386 }
  0x9b   : > { %v406_v9 = vsel %vm398_vm2, %v397_v21, %v2749_v23  ;;  %v396_v23 = vrot.slane %v2752_v24, 4 }
  0xa0   : > { %v589_v25 = vpop.permute.xlu1 %588 }
  0xa1   : > { %v603_v26 = vrot.slane %v589_v25, 4 }
  0xa2   : > { %v587_v27 = vpop.permute.xlu0 %586 }
  0xa3   : > { %v612_v28 = vsel %vm610_vm1, %v603_v26, %v589_v25  ;;  %v602_v29 = vrot.slane %v587_v27, 4  ;;  %v638_v30 = vmul.f32 %v603_v26, %v2740_v15  ;;  %v399_v25 = vsel %vm398_vm2, %v390_v3, %v2732_v13 }
  0xa4   : > { %v637_v32 = vmul.f32 %v612_v28, %v2757_v31  ;;  %v401_v26 = vsel %vm398_vm2, %v392_v51, %v2730_v12  ;;  %v437_v28 = vmul.f32 %v2757_v31, %v406_v9  ;;  %v402_v13 = vsel %vm398_vm2, %v393_v17, %v2743_v18 }
  0xa5   : > { %673 = vrot.lane.b32.xlu2 %v638_v30, %s2514_s21  ;;  %v636_v33 = vmul.f32 %v602_v29, %v2740_v15  ;;  %v611_v50 = vsel %vm610_vm1, %v602_v29, %v587_v27  ;;  %v423_v27 = vmul.f32 %v2757_v31, %v399_v25  ;;  %v427_v29 = vmul.f32 %v2757_v31, %v401_v26 }
  0xa6   : > { %671 = vrot.lane.b32.xlu1 %v637_v32, %s2514_s21  ;;  %v635_v53 = vmul.f32 %v611_v50, %v2757_v31  ;;  %v429_v12 = vmul.f32 %v2757_v31, %v402_v13  ;;  %v807_v32 = vld [vmem:[#allocation1 + $0x31] ss:$2 sm:$0xff]  ;;  %v404_v18 = vsel %vm398_vm2, %v395_v4, %v2727_v11  ;;  %v438_v11 = vmul.f32 %v397_v21, %v2783_v54 }
  0xa7   : > { %669 = vrot.lane.b32.xlu0 %v636_v33, %s2514_s21 }
  0xa8   : > { %v595_v34 = vpop.permute.xlu1 %594 }
  0xa9   : > { %v606_v35 = vrot.slane %v595_v34, 4 }
  0xaa   : > { %v593_v36 = vpop.permute.xlu0 %592 }
  0xab   : > { %v615_v37 = vsel %vm610_vm1, %v606_v35, %v595_v34  ;;  %v605_v38 = vrot.slane %v593_v36, 4  ;;  %v644_v39 = vmul.f32 %v606_v35, %v2740_v15  ;;  %v436_v34 = vmul.f32 %v396_v23, %v2783_v54 }
  0xac   : > { %v643_v40 = vmul.f32 %v615_v37, %v2757_v31  ;;  %v432_v37 = vmul.f32 %v394_v7, %v2783_v54 }
  0xad   : > { %685 = vrot.lane.b32.xlu2 %v644_v39, %s2514_s21  ;;  %v642_v41 = vmul.f32 %v605_v38, %v2740_v15  ;;  %v614_v60 = vsel %vm610_vm1, %v605_v38, %v593_v36  ;;  %v813_v38 = vpop.permute.xlu2 %812  ;;  %v433_v39 = vmul.f32 %v2757_v31, %v404_v18 }
  0xae   : > { %683 = vrot.lane.b32.xlu1 %v643_v40, %s2514_s21  ;;  %v641_v63 = vmul.f32 %v614_v60, %v2757_v31  ;;  %v826_v40 = vrot.slane %v813_v38, 4 }
  0xaf   : > { %681 = vrot.lane.b32.xlu0 %v642_v41, %s2514_s21 }
  0xb0   : > { %v601_v42 = vpop.permute.xlu1 %600  ;;  %v835_v56 = vsel %vm832_vm3, %v826_v40, %v813_v38  ;;  %v253_v38 = vld [vmem:[%s3967_s1 + $0x230] sm:$0xf] }
  0xb1   : > { %v609_v43 = vrot.slane %v601_v42, 4  ;;  %v861_v58 = vmul.f32 %v835_v56, %v2757_v31 }
  0xb2   : > { %v599_v44 = vpop.permute.xlu0 %598 }
  0xb3   : > { %v618_v45 = vsel %vm610_vm1, %v609_v43, %v601_v42  ;;  %v608_v46 = vrot.slane %v599_v44, 4  ;;  %v650_v47 = vmul.f32 %v609_v43, %v2740_v15  ;;  %v862_v42 = vmul.f32 %v826_v40, %v2740_v15 }
  0xb4   : > { %v649_v48 = vmul.f32 %v618_v45, %v2757_v31 }
  0xb5   : > { %697 = vrot.lane.b32.xlu2 %v650_v47, %s2514_s21  ;;  %v648_v49 = vmul.f32 %v608_v46, %v2740_v15  ;;  %v617_v2 = vsel %vm610_vm1, %v608_v46, %v599_v44  ;;  %v804_v44 = vld [vmem:[#allocation1 + $0x21] ss:$2 sm:$0xff]  ;;  %v819_v46 = vpop.permute.xlu2 %818  ;;  %vm2018_vm1 = vcmask 769024  }
  0xb6   : > { %695 = vrot.lane.b32.xlu1 %v649_v48, %s2514_s21  ;;  %v647_v5 = vmul.f32 %v617_v2, %v2757_v31 }
  0xb7   : > { %693 = vrot.lane.b32.xlu0 %v648_v49, %s2514_s21  ;;  %v405_v49 = vsel %vm398_vm2, %v396_v23, %v2752_v24  ;;  %vm2280_vm2 = vcmask 1041409  }
  0xb8   : > { %v811_v30 = vpop.permute.xlu1 %810  ;;  %v435_v52 = vmul.f32 %v2757_v31, %v405_v49 }
  0xb9   : > { %v825_v33 = vrot.slane %v811_v30, 4 }
  0xba   : > { %v809_v45 = vpop.permute.xlu0 %808 }
  0xbb   : > { %v834_v35 = vsel %vm832_vm3, %v825_v33, %v811_v30  ;;  %v824_v47 = vrot.slane %v809_v45, 4 }
  0xbc   : > { %v859_v36 = vmul.f32 %v834_v35, %v2757_v31 }
  0xbd   : > { %667 = vrot.lane.b32.xlu2 %v635_v53, %s2514_s21  ;;  %v858_v51 = vmul.f32 %v824_v47, %v2740_v15  ;;  %v829_v53 = vrot.slane %v819_v46, 4  ;;  %v833_v54 = vsel %vm832_vm3, %v824_v47, %v809_v45 }
  0xbe   : > { %465 = vrot.lane.b32.xlu1 %v428_v55, %s2515_s11  ;;  %v857_v24 = vmul.f32 %v833_v54, %v2757_v31 }
  0xbf   : > { %675 = vrot.lane.b32.xlu0 %v639_v57, %s2514_s21  ;;  %v868_v57 = vmul.f32 %v829_v53, %v2740_v15  ;;  %v838_v3 = vsel %vm832_vm3, %v829_v53, %v819_v46 }
  0xc0   : > { %v817_v41 = vpop.permute.xlu1 %816 }
  0xc1   : > { %v828_v43 = vrot.slane %v817_v41, 4 }
  0xc2   : > { %v815_v59 = vpop.permute.xlu0 %814 }
  0xc3   : > { %v837_v48 = vsel %vm832_vm3, %v828_v43, %v817_v41  ;;  %v827_v62 = vrot.slane %v815_v59, 4  ;;  %v866_v14 = vmul.f32 %v828_v43, %v2740_v15 }
  0xc4   : > { %v865_v50 = vmul.f32 %v837_v48, %v2757_v31 }
  0xc5   : > { %679 = vrot.lane.b32.xlu2 %v641_v63, %s2514_s21  ;;  %v860_v63 = vmul.f32 %v825_v33, %v2740_v15  ;;  %v836_v4 = vsel %vm832_vm3, %v827_v62, %v815_v59 }
  0xc6   : > { %459 = vrot.lane.b32.xlu1 %v425_v0, %s2515_s11  ;;  %v864_v0 = vmul.f32 %v827_v62, %v2740_v15 }
  0xc7   : > { %687 = vrot.lane.b32.xlu0 %v645_v1, %s2514_s21 }
  0xcd   : > { %691 = vrot.lane.b32.xlu2 %v647_v5, %s2514_s21  ;;  %v867_v5 = vmul.f32 %v838_v3, %v2757_v31 }
  0xce   : > { %477 = vrot.lane.b32.xlu1 %v434_v6, %s2515_s11  ;;  %v863_v6 = vmul.f32 %v836_v4, %v2757_v31 }
  0xcf   : > { %457 = vrot.lane.b32.xlu0 %v424_v8, %s2515_s11 }
  0xd5   : > { %461 = vrot.lane.b32.xlu2 %v426_v19, %s2515_s11 }
  0xd6   : > { %471 = vrot.lane.b32.xlu1 %v431_v20, %s2515_s11 }
  0xd7   : > { %469 = vrot.lane.b32.xlu0 %v430_v22, %s2515_s11 }
  0xdd   : > { %455 = vrot.lane.b32.xlu2 %v423_v27, %s2515_s11 }
  0xde   : > { %483 = vrot.lane.b32.xlu1 %v437_v28, %s2515_s11 }
  0xdf   : > { %463 = vrot.lane.b32.xlu0 %v427_v29, %s2515_s11 }
  0xe5   : > { %467 = vrot.lane.b32.xlu2 %v429_v12, %s2515_s11 }
  0xe6   : > { %822 = vrot.lane.b32.xlu1 %v807_v32, %s2513_s18  ;;  %v254_v32 = vld [vmem:[%s3967_s1 + $0x238] sm:$0xf] }
  0xe7   : > { %481 = vrot.lane.b32.xlu0 %v436_v34, %s2515_s11 }
  0xed   : > { %473 = vrot.lane.b32.xlu2 %v432_v37, %s2515_s11 }
  0xee   : > { %893 = vrot.lane.b32.xlu1 %v859_v36, %s2516_s30  ;;  %v278_v36 = vrot.slane %v254_v32, 4 }
  0xef   : > { %475 = vrot.lane.b32.xlu0 %v433_v39, %s2515_s11 }
  0xf0   : > { %v287_v40 = vsel %vm279_vm0, %v253_v38, %v278_v36 }
  0xf1   : > { %v303_v46 = vmul.f32 %v2757_v31, %v287_v40 }
  0xf5   : > { %485 = vrot.lane.b32.xlu2 %v438_v11, %s2515_s11 }
  0xf6   : > { %899 = vrot.lane.b32.xlu1 %v862_v42, %s2516_s30 }
  0xf7   : > { %820 = vrot.lane.b32.xlu0 %v804_v44, %s2513_s18 }
  0xfd   : > { %479 = vrot.lane.b32.xlu2 %v435_v52, %s2515_s11  ;;  %s2444_s11 = sshll.u32 %s3975_s12, 4 }
  0xfe   : > { %905 = vrot.lane.b32.xlu1 %v865_v50, %s2516_s30  ;;  %s237_s24 = scalar_lea.vmem %s3969_s3, %s2444_s11 }
  0xff   : > { %891 = vrot.lane.b32.xlu0 %v858_v51, %s2516_s30  ;;  %v2877_v55 = vpop.permute.xlu2 %673 }
 0x102   : > { %v2883_v60 = vpop.permute.xlu1 %677 }
 0x105   : > { %889 = vrot.lane.b32.xlu2 %v857_v24, %s2516_s30 }
 0x106   : > { %911 = vrot.lane.b32.xlu1 %v868_v57, %s2516_s30 }
 0x107   : > { %897 = vrot.lane.b32.xlu0 %v861_v58, %s2516_s30  ;;  %v2888_v61 = vpop.permute.xlu2 %685 }
 0x10a   : > { %v2893_v1 = vpop.permute.xlu1 %689 }
 0x10d   : > { %895 = vrot.lane.b32.xlu2 %v860_v63, %s2516_s30 }
 0x10f   : > { %903 = vrot.lane.b32.xlu0 %v864_v0, %s2516_s30  ;;  %v698_v2 = vpop.permute.xlu2 %697 }
 0x110   : > { %v714_v44 = vrot.slane %v698_v2, 4  ;;  %v975_v2 = vld [vmem:[%s3967_s1 + $0x78] sm:$0xf] }
 0x115   : > { %901 = vrot.lane.b32.xlu2 %v863_v6, %s2516_s30  ;;  %v974_v6 = vld [vmem:[%s3967_s1 + $0x70] sm:$0xf] }
 0x117   : > { %909 = vrot.lane.b32.xlu0 %v867_v5, %s2516_s30  ;;  %v2902_v7 = vpop.permute.xlu2 %667  ;;  %v1005_v5 = vrot.slane %v975_v2, 4 }
 0x118   : > { %v2904_v8 = vpop.permute.xlu1 %671 }
 0x119   : > { %v2906_v10 = vpop.permute.xlu0 %669 }
 0x11d   : > { %907 = vrot.lane.b32.xlu2 %v866_v14, %s2516_s30 }
 0x11f   : > { %v2910_v16 = vpop.permute.xlu2 %679 }
 0x120   : > { %v2912_v17 = vpop.permute.xlu1 %683 }
 0x121   : > { %v2914_v19 = vpop.permute.xlu0 %681 }
 0x127   : > { %v2916_v20 = vpop.permute.xlu2 %691 }
 0x128   : > { %v696_v21 = vpop.permute.xlu1 %695 }
 0x129   : > { %v2918_v22 = vpop.permute.xlu0 %693  ;;  %v713_v41 = vrot.slane %v696_v21, 4 }
 0x12b   : > { %v730_v48 = vsel %vm279_vm0, %v713_v41, %v714_v44  ;;  %v244_v44 = vld [vmem:[%s3967_s1 + $0xa8] sm:$0xf] }
 0x12c   : > { %v731_v52 = vsel %vm716_vm5, %v696_v21, %v730_v48 }
 0x12f   : > { %v2920_v25 = vpop.permute.xlu2 %461 }
 0x130   : > { %v2922_v9 = vpop.permute.xlu1 %465 }
 0x131   : > { %v2924_v26 = vpop.permute.xlu0 %675 }
 0x137   : > { %v2926_v27 = vpop.permute.xlu2 %455 }
 0x138   : > { %v2928_v28 = vpop.permute.xlu1 %459 }
 0x139   : > { %v2930_v29 = vpop.permute.xlu0 %687 }
 0x13f   : > { %v2932_v13 = vpop.permute.xlu2 %467 }
 0x140   : > { %v478_v30 = vpop.permute.xlu1 %477 }
 0x141   : > { %v2934_v23 = vpop.permute.xlu0 %457 }
 0x147   : > { %v474_v12 = vpop.permute.xlu2 %473 }
 0x148   : > { %v496_v33 = vrot.slane %v474_v12, 4  ;;  %v472_v34 = vpop.permute.xlu1 %471  ;;  %v498_v12 = vrot.slane %v478_v30, 4  ;;  %v248_v30 = vld [vmem:[%s3967_s1 + $0x148] sm:$0xf] }
 0x149   : > { %v2939_v35 = vpop.permute.xlu0 %469  ;;  %v495_v18 = vrot.slane %v472_v34, 4  ;;  %v275_v48 = vrot.slane %v248_v30, 4  ;;  %v703_v30 = vrot.slane %v2924_v26, 4 }
 0x14b   : > { %v512_v37 = vsel %vm279_vm0, %v495_v18, %v496_v33  ;;  %v1013_v33 = vsel %vm279_vm0, %v974_v6, %v1005_v5  ;;  %v981_v18 = vld [vmem:[%s3967_s1 + $0x168] sm:$0xf] }
 0x14c   : > { %v2946_v39 = vsel %vm504_vm4, %v472_v34, %v512_v37  ;;  %v1008_v40 = vrot.slane %v981_v18, 4 }
 0x14f   : > { %v486_v42 = vpop.permute.xlu2 %485 }
 0x150   : > { %v502_v11 = vrot.slane %v486_v42, 4  ;;  %v484_v43 = vpop.permute.xlu1 %483  ;;  %v980_v42 = vld [vmem:[%s3967_s1 + $0x160] sm:$0xf] }
 0x151   : > { %v2949_v45 = vpop.permute.xlu0 %463  ;;  %v501_v47 = vrot.slane %v484_v43, 4 }
 0x153   : > { %v518_v49 = vsel %vm279_vm0, %v501_v47, %v502_v11 }
 0x154   : > { %v519_v50 = vsel %vm504_vm4, %v484_v43, %v518_v49  ;;  %v1016_v49 = vsel %vm279_vm0, %v980_v42, %v1008_v40 }
 0x155   : > { %v535_v51 = vadd.f32 %v519_v50, %v303_v46 }
 0x157   : > { %v480_v53 = vpop.permute.xlu2 %479  ;;  %v2956_v54 = vadd.f32 %v731_v52, %v535_v51  ;;  %v247_v51 = vld [vmem:[%s3967_s1 + $0x140] sm:$0xf] }
 0x158   : > { %v499_v56 = vrot.slane %v480_v53, 4  ;;  %v2958_v24 = vpop.permute.xlu1 %822  ;;  %v284_v2 = vsel %vm279_vm0, %v247_v51, %v275_v48  ;;  %v979_v48 = vld [vmem:[%s3967_s1 + $0x118] sm:$0xf] }
 0x159   : > { %v482_v57 = vpop.permute.xlu0 %481  ;;  %v831_v58 = vrot.slane %v2958_v24, 4 }
 0x15a   : > { %v500_v59 = vrot.slane %v482_v57, 4  ;;  %v987_v57 = vld [vmem:[%s3967_s1 + $0x258] sm:$0xf] }
 0x15b   : > { %v840_v62 = vsel %vm832_vm3, %v831_v58, %v2958_v24  ;;  %v1007_v24 = vrot.slane %v979_v48, 4 }
 0x15c   : > { %v516_v63 = vsel %vm279_vm0, %v499_v56, %v500_v59  ;;  %v871_v0 = vmul.f32 %v840_v62, %v2757_v31  ;;  %v973_v56 = vld [vmem:[%s3967_s1 + $0x28] sm:$0xf]  ;;  %v273_v59 = vrot.slane %v244_v44, 4  ;;  %v708_v44 = vrot.slane %v2888_v61, 4 }
 0x15d   : > { %v2971_v3 = vsel %vm504_vm4, %v480_v53, %v516_v63  ;;  %v243_v63 = vld [vmem:[%s3967_s1 + $0xa0] sm:$0xf]  ;;  %v1004_v6 = vrot.slane %v973_v56, 4 }
 0x15e   : > { %917 = vrot.lane.b32.xlu1 %v871_v0, %s2516_s30  ;;  %v491_v0 = vrot.slane %v2949_v45, 4 }
 0x15f   : > { %v2974_v4 = vpop.permute.xlu2 %889 }
 0x160   : > { %v894_v14 = vpop.permute.xlu1 %893  ;;  %v921_v40 = vrot.slane %v2974_v4, 4 }
 0x161   : > { %v476_v21 = vpop.permute.xlu0 %475  ;;  %v923_v37 = vrot.slane %v894_v14, 4 }
 0x162   : > { %v497_v32 = vrot.slane %v476_v21, 4 }
 0x164   : > { %v514_v34 = vsel %vm279_vm0, %v497_v32, %v498_v12  ;;  %v972_v12 = vld [vmem:[%s3967_s1 + $0x20] sm:$0xf]  ;;  %v986_v32 = vld [vmem:[%s3967_s1 + $0x250] sm:$0xf] }
 0x165   : > { %v2985_v36 = vsel %vm504_vm4, %v476_v21, %v514_v34  ;;  %v492_v21 = vrot.slane %v2922_v9, 4  ;;  %v282_v34 = vsel %vm279_vm0, %v243_v63, %v273_v59 }
 0x166   : > { %1022 = vrot.lane.b32.xlu1 %v1013_v33, %s2517_s19  ;;  %v707_v33 = vrot.slane %v2912_v17, 4 }
 0x167   : > { %v896_v38 = vpop.permute.xlu2 %895 }
 0x168   : > { %v924_v41 = vrot.slane %v896_v38, 4  ;;  %v2994_v43 = vpop.permute.xlu1 %899  ;;  %v508_v38 = vsel %vm279_vm0, %v491_v0, %v492_v21  ;;  %v724_v56 = vsel %vm279_vm0, %v707_v33, %v708_v44 }
 0x169   : > { %v821_v11 = vpop.permute.xlu0 %820  ;;  %v509_v51 = vsel %vm504_vm4, %v2949_v45, %v508_v38  ;;  %v725_v63 = vsel %vm716_vm5, %v2912_v17, %v724_v56 }
 0x16a   : > { %v830_v46 = vrot.slane %v821_v11, 4  ;;  %v940_v47 = vsel %vm279_vm0, %v923_v37, %v924_v41  ;;  %v300_v37 = vmul.f32 %v2757_v31, %v284_v2  ;;  %v1012_v41 = vsel %vm279_vm0, %v972_v12, %v1004_v6  ;;  %v976_v2 = vld [vmem:[%s3967_s1 + $0xc0] sm:$0xf] }
 0x16b   : > { %v3002_v50 = vsel %vm938_vm6, %v894_v14, %v940_v47  ;;  %v1011_v14 = vrot.slane %v987_v57, 4 }
 0x16c   : > { %v839_v52 = vsel %vm832_vm3, %v830_v46, %v821_v11  ;;  %v870_v53 = vmul.f32 %v830_v46, %v2740_v15  ;;  %v298_v46 = vmul.f32 %v2757_v31, %v282_v34  ;;  %v532_v57 = vadd.f32 %v2946_v39, %v300_v37 }
 0x16d   : > { %v869_v62 = vmul.f32 %v839_v52, %v2757_v31  ;;  %v1019_v11 = vsel %vm279_vm0, %v986_v32, %v1011_v14  ;;  %v872_v52 = vmul.f32 %v831_v58, %v2740_v15  ;;  %vm2283_vm3 = vcmask 1042434  }
 0x16e   : > { %915 = vrot.lane.b32.xlu0 %v870_v53, %s2516_s30  ;;  %1028 = vrot.lane.b32.xlu1 %v1016_v49, %s2517_s19  ;;  %v704_v49 = vrot.slane %v2883_v60, 4  ;;  %v977_v53 = vld [vmem:[%s3967_s1 + $0xc8] sm:$0xf]  ;;  %v530_v58 = vadd.f32 %v509_v51, %v298_v46  ;;  %v744_v6 = vadd.f32 %v725_v63, %v532_v57 }
 0x16f   : > { %913 = vrot.lane.b32.xlu2 %v869_v62, %s2516_s30  ;;  %v3024_v5 = vpop.permute.xlu2 %901  ;;  %v978_v62 = vld [vmem:[%s3967_s1 + $0x110] sm:$0xf]  ;;  %v1006_v39 = vrot.slane %v977_v53, 4  ;;  %v252_v57 = vld [vmem:[%s3967_s1 + $0x1e8] sm:$0xf] }
 0x170   : > { %v906_v42 = vpop.permute.xlu1 %905  ;;  %v720_v45 = vsel %vm279_vm0, %v703_v30, %v704_v49  ;;  %v1015_v12 = vsel %vm279_vm0, %v978_v62, %v1007_v24  ;;  %v984_v30 = vld [vmem:[%s3967_s1 + $0x200] sm:$0xf]  ;;  %v927_v44 = vrot.slane %v3024_v5, 4  ;;  %v277_v24 = vrot.slane %v252_v57, 4 }
 0x171   : > { %v892_v18 = vpop.permute.xlu0 %891  ;;  %v929_v60 = vrot.slane %v906_v42, 4  ;;  %v1014_v17 = vsel %vm279_vm0, %v976_v2, %v1006_v39  ;;  %v712_v2 = vrot.slane %v2918_v22, 4  ;;  %v1184_v22 = vld [vmem:[%s3967_s1 + $0x70] sm:$0xf0] }
 0x172   : > { %v922_v9 = vrot.slane %v892_v18, 4  ;;  %v985_v18 = vld [vmem:[%s3967_s1 + $0x208] sm:$0xf]  ;;  %1218 = vst.sshfl [vmem:[#allocation1 + $0x10] sm:$0xff pattern:$0x75316420] %v1184_v22 }
 0x174   : > { %v937_v47 = vsel %vm279_vm0, %v921_v40, %v922_v9  ;;  %v1010_v9 = vrot.slane %v985_v18, 4 }
 0x175   : > { %v3055_v61 = vsel %vm938_vm6, %v2974_v4, %v937_v47  ;;  %v926_v4 = vrot.slane %v2994_v43, 4  ;;  %v721_v43 = vsel %vm716_vm5, %v2924_v26, %v720_v45  ;;  %v983_v26 = vld [vmem:[%s3967_s1 + $0x1b8] sm:$0xf] }
 0x176   : > { %1020 = vrot.lane.b32.xlu0 %v1012_v41, %s2517_s19  ;;  %1034 = vrot.lane.b32.xlu1 %v1019_v11, %s2517_s19  ;;  %v742_v33 = vadd.f32 %v721_v43, %v530_v58  ;;  %v1009_v41 = vrot.slane %v983_v26, 4  ;;  %v982_v11 = vld [vmem:[%s3967_s1 + $0x1b0] sm:$0xf]  ;;  %v1018_v47 = vsel %vm279_vm0, %v984_v30, %v1010_v9 }
 0x177   : > { %919 = vrot.lane.b32.xlu2 %v872_v52, %s2516_s30  ;;  %v908_v15 = vpop.permute.xlu2 %907  ;;  %s2523_s30 = smov 33  }
 0x178   : > { %v930_v59 = vrot.slane %v908_v15, 4  ;;  %v1017_v49 = vsel %vm279_vm0, %v982_v11, %v1009_v41  ;;  %v3111_v52 = vpop.permute.xlu1 %911 }
 0x179   : > { %v898_v0 = vpop.permute.xlu0 %897 }
 0x17a   : > { %v925_v14 = vrot.slane %v898_v0, 4  ;;  %v946_v21 = vsel %vm279_vm0, %v929_v60, %v930_v59 }
 0x17b   : > { %v947_v32 = vsel %vm938_vm6, %v906_v42, %v946_v21 }
 0x17c   : > { %v942_v34 = vsel %vm279_vm0, %v925_v14, %v926_v4  ;;  %v3085_v37 = vadd.f32 %v947_v32, %v744_v6  ;;  %v711_v6 = vrot.slane %v2916_v20, 4 }
 0x17d   : > { %v943_v38 = vsel %vm938_vm6, %v898_v0, %v942_v34  ;;  %v3136_v34 = vld [vmem:[%s2737_s20 + $0x8] sm:$0xf] }
 0x17e   : > { %v3091_v40 = vadd.f32 %v943_v38, %v742_v33  ;;  %1026 = vrot.lane.b32.xlu0 %v1015_v12, %s2517_s19  ;;  %v728_v32 = vsel %vm279_vm0, %v711_v6, %v712_v2  ;;  %v1190_v2 = vld [vmem:[%s3967_s1 + $0x160] sm:$0xf0]  ;;  %v1191_v6 = vld [vmem:[%s3967_s1 + $0x168] sm:$0xf0] }
 0x17f   : > { %1024 = vrot.lane.b32.xlu2 %v1014_v17, %s2517_s19  ;;  %v1185_v17 = vld [vmem:[%s3967_s1 + $0x78] sm:$0xf0] }
 0x180   : > { %1219 = vst.sshfl [vmem:[#allocation1 + $0x18] sm:$0xff pattern:$0x75316420] %v1185_v17  ;;  %v1188_v17 = vld [vmem:[%s3967_s1 + $0x110] sm:$0xf0] }
 0x181   : > { %v904_v42 = vpop.permute.xlu0 %903  ;;  %1226 = vst.sshfl [vmem:[#allocation1 + $0x30] sm:$0xff pattern:$0x75316420] %v1188_v17  ;;  %v489_v17 = vrot.slane %v2928_v28, 4 }
 0x182   : > { %v928_v46 = vrot.slane %v904_v42, 4 }
 0x184   : > { %v944_v48 = vsel %vm279_vm0, %v927_v44, %v928_v46 }
 0x185   : > { %v3107_v51 = vsel %vm938_vm6, %v3024_v5, %v944_v48  ;;  %v251_v5 = vld [vmem:[%s3967_s1 + $0x1e0] sm:$0xf]  ;;  %v1193_v48 = vld [vmem:[%s3967_s1 + $0x1b8] sm:$0xf0] }
 0x186   : > { %1032 = vrot.lane.b32.xlu0 %v1018_v47, %s2517_s19  ;;  %v286_v62 = vsel %vm279_vm0, %v251_v5, %v277_v24  ;;  %v1192_v47 = vld [vmem:[%s3967_s1 + $0x1b0] sm:$0xf0] }
 0x187   : > { %1030 = vrot.lane.b32.xlu2 %v1017_v49, %s2517_s19  ;;  %v302_v14 = vmul.f32 %v2757_v31, %v286_v62  ;;  %s2518_s19 = smov 111   ;;  %v1182_v49 = vld [vmem:[%s3967_s1 + $0x20] sm:$0xf0]  ;;  %v3171_v57 = vld [vmem:[#allocation1 + $0x11] ss:$2 sm:$0xff] }
 0x188   : > { %1214 = vst.sshfl [vmem:[#allocation1] sm:$0xff pattern:$0x75316420] %v1182_v49 }
 0x189   : > { %v3125_v39 = vpop.permute.xlu0 %909  ;;  %v534_v33 = vadd.f32 %v2971_v3, %v302_v14  ;;  %v729_v3 = vsel %vm716_vm5, %v2916_v20, %v728_v32  ;;  %1233 = vst.sshfl [vmem:[#allocation1 + $0x10] sm:$0xff pattern:$0x75316420] %v1192_v47  ;;  %v1186_v47 = vld [vmem:[%s3967_s1 + $0xc0] sm:$0xf0] }
 0x18a   : > { %1234 = vst.sshfl [vmem:[#allocation1 + $0x18] sm:$0xff pattern:$0x75316420] %v1193_v48  ;;  %v1187_v48 = vld [vmem:[%s3967_s1 + $0xc8] sm:$0xf0] }
 0x18b   : > { %v746_v41 = vadd.f32 %v729_v3, %v534_v33  ;;  %1222 = vst.sshfl [vmem:[#allocation1 + $0x20] sm:$0xff pattern:$0x75316420] %v1186_v47 }
 0x18c   : > { %1223 = vst.sshfl [vmem:[#allocation1 + $0x28] sm:$0xff pattern:$0x75316420] %v1187_v48 }
 0x1c9   : > { %v914_v53 = vpop.permute.xlu2 %913 }
 0x1ca   : > { %v933_v26 = vrot.slane %v914_v53, 4 }
 0x1d0   : > { %v918_v56 = vpop.permute.xlu1 %917 }
 0x1d1   : > { %v920_v60 = vpop.permute.xlu2 %919  ;;  %v935_v45 = vrot.slane %v918_v56, 4 }
 0x1d2   : > { %v936_v15 = vrot.slane %v920_v60, 4 }
 0x1d4   : > { %v952_v58 = vsel %vm279_vm0, %v935_v45, %v936_v15 }
 0x1d5   : > { %v953_v4 = vsel %vm938_vm6, %v918_v56, %v952_v58 }
 0x1d6   : > { %v3122_v59 = vadd.f32 %v953_v4, %v2956_v54 }
 0x1d8   : > { %v1023_v63 = vpop.permute.xlu1 %1022 }
 0x1d9   : > { %v1037_v0 = vrot.slane %v1023_v63, 4  ;;  %v1025_v43 = vpop.permute.xlu2 %1024 }
 0x1da   : > { %v1038_v12 = vrot.slane %v1025_v43, 4 }
 0x1db   : > { %v1046_v21 = vsel %vm1044_vm7, %v1037_v0, %v1023_v63 }
 0x1dc   : > { %v1071_v54 = vmul.f32 %v1046_v21, %v2757_v31  ;;  %v1074_v30 = vmul.f32 %v1038_v12, %v3136_v34  ;;  %v1047_v62 = vsel %vm1044_vm7, %v1038_v12, %v1025_v43  ;;  %v1072_v43 = vmul.f32 %v1037_v0, %v3136_v34  ;;  %v1189_v0 = vld [vmem:[%s3967_s1 + $0x118] sm:$0xf0] }
 0x1dd   : > { %v1073_v32 = vmul.f32 %v1047_v62, %v2757_v31  ;;  %1227 = vst.sshfl [vmem:[#allocation1 + $0x38] sm:$0xff pattern:$0x75316420] %v1189_v0  ;;  %v490_v0 = vrot.slane %v2920_v25, 4  ;;  %v240_v25 = vld [vmem:[%s3967_s1 + $0x8] sm:$0xf] }
 0x1de   : > { %1105 = vrot.lane.b32.xlu1 %v1071_v54, %s2518_s19  ;;  %v271_v48 = vrot.slane %v240_v25, 4 }
 0x1e0   : > { %v916_v18 = vpop.permute.xlu0 %915  ;;  %v3144_v38 = vpop.permute.xlu1 %1028 }
 0x1e1   : > { %v934_v9 = vrot.slane %v916_v18, 4  ;;  %v1040_v11 = vrot.slane %v3144_v38, 4  ;;  %v1031_v58 = vpop.permute.xlu2 %1030 }
 0x1e2   : > { %v1041_v4 = vrot.slane %v1031_v58, 4 }
 0x1e3   : > { %v950_v42 = vsel %vm279_vm0, %v933_v26, %v934_v9  ;;  %v1049_v20 = vsel %vm1044_vm7, %v1040_v11, %v3144_v38  ;;  %v1616_v9 = vld [vmem:[%s3967_s1 + $0x30] sm:$0xf0]  ;;  %v1622_v38 = vld [vmem:[%s3967_s1 + $0x120] sm:$0xf0] }
 0x1e4   : > { %v951_v44 = vsel %vm938_vm6, %v914_v53, %v950_v42  ;;  %v1183_v53 = vld [vmem:[%s3967_s1 + $0x28] sm:$0xf0]  ;;  %v1077_v45 = vmul.f32 %v1049_v20, %v2757_v31  ;;  %v1080_v14 = vmul.f32 %v1041_v4, %v3136_v34  ;;  %v1197_v20 = vld [vmem:[%s3967_s1 + $0x258] sm:$0xf0]  ;;  %v1050_v49 = vsel %vm1044_vm7, %v1041_v4, %v1031_v58  ;;  %v1618_v58 = vld [vmem:[%s3967_s1 + $0x80] sm:$0xf0] }
 0x1e5   : > { %v3152_v46 = vadd.f32 %v951_v44, %v746_v41  ;;  %1215 = vst.sshfl [vmem:[#allocation1 + $0x8] sm:$0xff pattern:$0x75316420] %v1183_v53  ;;  %v1196_v44 = vld [vmem:[%s3967_s1 + $0x250] sm:$0xf0] }
 0x1e6   : > { %1111 = vrot.lane.b32.xlu1 %v1074_v30, %s2518_s19  ;;  %v1617_v30 = vld [vmem:[%s3967_s1 + $0x38] sm:$0xf0] }
 0x1e7   : > { %v1229_v53 = vld [vmem:[#allocation1 + $0x31] ss:$2 sm:$0xff] }
 0x1e8   : > { %v1021_v56 = vpop.permute.xlu0 %1020  ;;  %v3181_v63 = vpop.permute.xlu1 %1034  ;;  %1239 = vst.sshfl [vmem:[#allocation1 + $0x30] sm:$0xff pattern:$0x75316420] %v1196_v44 }
 0x1e9   : > { %v1036_v60 = vrot.slane %v1021_v56, 4  ;;  %v1043_v33 = vrot.slane %v3181_v63, 4  ;;  %1240 = vst.sshfl [vmem:[#allocation1 + $0x38] sm:$0xff pattern:$0x75316420] %v1197_v20 }
 0x1eb   : > { %v1045_v15 = vsel %vm1044_vm7, %v1036_v60, %v1021_v56  ;;  %v1070_v24 = vmul.f32 %v1036_v60, %v3136_v34  ;;  %v1052_v22 = vsel %vm1044_vm7, %v1043_v33, %v3181_v63  ;;  %v1079_v60 = vmul.f32 %v1050_v49, %v2757_v31  ;;  %v242_v63 = vld [vmem:[%s3967_s1 + $0x58] sm:$0xf] }
 0x1ec   : > { %v1069_v5 = vmul.f32 %v1045_v15, %v2757_v31  ;;  %v3190_v54 = vld [vmem:[#allocation1 + $0x1] ss:$2 sm:$0xff]  ;;  %v1083_v3 = vmul.f32 %v1052_v22, %v2757_v31 }
 0x1ed   : > { %1103 = vrot.lane.b32.xlu0 %v1070_v24, %s2518_s19  ;;  %1230 = vst.sshfl [vmem:[#allocation1] sm:$0xff pattern:$0x75316420] %v1190_v2  ;;  %v1235_v24 = vld [vmem:[#allocation1 + $0x11] ss:$2 sm:$0xff] }
 0x1ee   : > { %1101 = vrot.lane.b32.xlu2 %v1069_v5, %s2518_s19  ;;  %1117 = vrot.lane.b32.xlu1 %v1077_v45, %s2518_s19  ;;  %1231 = vst.sshfl [vmem:[#allocation1 + $0x8] sm:$0xff pattern:$0x75316420] %v1191_v6  ;;  %v1078_v45 = vmul.f32 %v1040_v11, %v3136_v34  ;;  %v1619_v5 = vld [vmem:[%s3967_s1 + $0x88] sm:$0xf0] }
 0x1ef   : > { %1652 = vst.sshfl [vmem:[#allocation1 + $0x10] sm:$0xff pattern:$0x75316420] %v1618_v58  ;;  %v1623_v11 = vld [vmem:[%s3967_s1 + $0x128] sm:$0xf0]  ;;  %v487_v58 = vrot.slane %v2926_v27, 4 }
 0x1f0   : > { %v1027_v21 = vpop.permute.xlu0 %1026  ;;  %1653 = vst.sshfl [vmem:[#allocation1 + $0x18] sm:$0xff pattern:$0x75316420] %v1619_v5  ;;  %v1241_v2 = vld [vmem:[#allocation1 + $0x31] ss:$2 sm:$0xff] }
 0x1f1   : > { %v1039_v12 = vrot.slane %v1027_v21, 4  ;;  %v1194_v6 = vld [vmem:[%s3967_s1 + $0x200] sm:$0xf0]  ;;  %1660 = vst.sshfl [vmem:[#allocation1 + $0x30] sm:$0xff pattern:$0x75316420] %v1622_v38 }
 0x1f2   : > { %1661 = vst.sshfl [vmem:[#allocation1 + $0x38] sm:$0xff pattern:$0x75316420] %v1623_v11 }
 0x1f3   : > { %v1048_v18 = vsel %vm1044_vm7, %v1039_v12, %v1027_v21  ;;  %v1076_v26 = vmul.f32 %v1039_v12, %v3136_v34  ;;  %v1084_v12 = vmul.f32 %v1043_v33, %v3136_v34  ;;  %v272_v33 = vrot.slane %v242_v63, 4 }
 0x1f4   : > { %v1075_v42 = vmul.f32 %v1048_v18, %v2757_v31 }
 0x1f5   : > { %1109 = vrot.lane.b32.xlu0 %v1073_v32, %s2518_s19  ;;  %v1232_v41 = vld [vmem:[#allocation1 + $0x1] ss:$2 sm:$0xff]  ;;  %v1620_v32 = vld [vmem:[%s3967_s1 + $0xd0] sm:$0xf0] }
 0x1f6   : > { %1107 = vrot.lane.b32.xlu2 %v1072_v43, %s2518_s19  ;;  %1123 = vrot.lane.b32.xlu1 %v1080_v14, %s2518_s19  ;;  %1648 = vst.sshfl [vmem:[#allocation1] sm:$0xff pattern:$0x75316420] %v1616_v9  ;;  %v1225_v14 = vld [vmem:[#allocation1 + $0x21] ss:$2 sm:$0xff] }
 0x1f7   : > { %1649 = vst.sshfl [vmem:[#allocation1 + $0x8] sm:$0xff pattern:$0x75316420] %v1617_v30  ;;  %v1621_v43 = vld [vmem:[%s3967_s1 + $0xd8] sm:$0xf0] }
 0x1f8   : > { %v1033_v56 = vpop.permute.xlu0 %1032  ;;  %1236 = vst.sshfl [vmem:[#allocation1 + $0x20] sm:$0xff pattern:$0x75316420] %v1194_v6 }
 0x1f9   : > { %v1042_v15 = vrot.slane %v1033_v56, 4 }
 0x1fb   : > { %v1051_v4 = vsel %vm1044_vm7, %v1042_v15, %v1033_v56  ;;  %v1082_v62 = vmul.f32 %v1042_v15, %v3136_v34  ;;  %vm2298_vm7 = vcmask 1047559  }
 0x1fc   : > { %v1081_v21 = vmul.f32 %v1051_v4, %v2757_v31  ;;  %v700_v4 = vrot.slane %v2906_v10, 4 }
 0x1fd   : > { %1115 = vrot.lane.b32.xlu0 %v1076_v26, %s2518_s19  ;;  %v506_v26 = vsel %vm279_vm0, %v489_v17, %v490_v0 }
 0x1fe   : > { %1113 = vrot.lane.b32.xlu2 %v1075_v42, %s2518_s19  ;;  %1129 = vrot.lane.b32.xlu1 %v1083_v3, %s2518_s19  ;;  %v701_v3 = vrot.slane %v2904_v8, 4  ;;  %v702_v42 = vrot.slane %v2877_v55, 4  ;;  %v239_v55 = vld [vmem:[%s3967_s1] sm:$0xf] }
 0x1ff   : > { %v280_v5 = vsel %vm279_vm0, %v239_v55, %v271_v48  ;;  %v3352_v48 = vld [vmem:[%s2737_s20] sm:$0xff] }
 0x200   : > { %v718_v44 = vsel %vm279_vm0, %v701_v3, %v702_v42 }
 0x201   : > { %v719_v20 = vsel %vm716_vm5, %v2904_v8, %v718_v44 }
 0x205   : > { %1121 = vrot.lane.b32.xlu0 %v1079_v60, %s2518_s19 }
 0x206   : > { %1119 = vrot.lane.b32.xlu2 %v1078_v45, %s2518_s19  ;;  %1244 = vrot.lane.b32.xlu1 %v3171_v57, %s2519_s4  ;;  %v1195_v57 = vld [vmem:[%s3967_s1 + $0x208] sm:$0xf0] }
 0x207   : > { %1237 = vst.sshfl [vmem:[#allocation1 + $0x28] sm:$0xff pattern:$0x75316420] %v1195_v57 }
 0x20d   : > { %1127 = vrot.lane.b32.xlu0 %v1082_v62, %s2518_s19  ;;  %v699_v62 = vrot.slane %v2902_v7, 4 }
 0x20e   : > { %1125 = vrot.lane.b32.xlu2 %v1081_v21, %s2518_s19  ;;  %1250 = vrot.lane.b32.xlu1 %v1232_v41, %s2519_s4  ;;  %v1238_v22 = vld [vmem:[#allocation1 + $0x21] ss:$2 sm:$0xff]  ;;  %v507_v41 = vsel %vm504_vm4, %v2928_v28, %v506_v26  ;;  %v488_v28 = vrot.slane %v2934_v23, 4  ;;  %v296_v23 = vmul.f32 %v2757_v31, %v280_v5  ;;  %v246_v21 = vld [vmem:[%s3967_s1 + $0xf8] sm:$0xf]  ;;  %v493_v26 = vrot.slane %v2932_v13, 4 }
 0x20f   : > { %1656 = vst.sshfl [vmem:[#allocation1 + $0x20] sm:$0xff pattern:$0x75316420] %v1620_v32  ;;  %v715_v57 = vsel %vm279_vm0, %v699_v62, %v700_v4 }
 0x210   : > { %1657 = vst.sshfl [vmem:[#allocation1 + $0x28] sm:$0xff pattern:$0x75316420] %v1621_v43  ;;  %v503_v11 = vsel %vm279_vm0, %v487_v58, %v488_v28  ;;  %v717_v10 = vsel %vm716_vm5, %v2902_v7, %v715_v57  ;;  %v274_v43 = vrot.slane %v246_v21, 4 }
 0x211   : > { %v505_v6 = vsel %vm504_vm4, %v2926_v27, %v503_v11  ;;  %v245_v27 = vld [vmem:[%s3967_s1 + $0xf0] sm:$0xf]  ;;  %v709_v11 = vrot.slane %v2930_v29, 4 }
 0x215   : > { %1242 = vrot.lane.b32.xlu0 %v3190_v54, %s2519_s4  ;;  %v241_v54 = vld [vmem:[%s3967_s1 + $0x50] sm:$0xf] }
 0x216   : > { %1131 = vrot.lane.b32.xlu2 %v1084_v12, %s2518_s19  ;;  %1256 = vrot.lane.b32.xlu1 %v1241_v2, %s2519_s4  ;;  %v281_v18 = vsel %vm279_vm0, %v241_v54, %v272_v33  ;;  %v494_v54 = vrot.slane %v2939_v35, 4 }
 0x217   : > { %v297_v30 = vmul.f32 %v2757_v31, %v281_v18 }
 0x218   : > { %v510_v35 = vsel %vm279_vm0, %v493_v26, %v494_v54 }
 0x219   : > { %v529_v47 = vadd.f32 %v507_v41, %v297_v30  ;;  %v283_v41 = vsel %vm279_vm0, %v245_v27, %v274_v43 }
 0x21b   : > { %v741_v56 = vadd.f32 %v719_v20, %v529_v47  ;;  %v705_v20 = vrot.slane %v2910_v16, 4 }
 0x21d   : > { %1248 = vrot.lane.b32.xlu0 %v1229_v53, %s2519_s4  ;;  %v963_v15 = vadd.f32 %v3002_v50, %v741_v56  ;;  %v511_v56 = vsel %vm504_vm4, %v2932_v13, %v510_v35  ;;  %vm2286_vm4 = vcmask 1043459  }
 0x21e   : > { %1246 = vrot.lane.b32.xlu2 %v1225_v14, %s2519_s4  ;;  %v528_v14 = vadd.f32 %v505_v6, %v296_v23  ;;  %v932_v6 = vrot.slane %v3111_v52, 4 }
 0x220   : > { %v740_v12 = vadd.f32 %v717_v10, %v528_v14 }
 0x222   : > { %v962_v18 = vadd.f32 %v3055_v61, %v740_v12  ;;  %v250_v61 = vld [vmem:[%s3967_s1 + $0x198] sm:$0xf] }
 0x225   : > { %1254 = vrot.lane.b32.xlu0 %v1238_v22, %s2519_s4 }
 0x226   : > { %1252 = vrot.lane.b32.xlu2 %v1235_v24, %s2519_s4 }
 0x248   : > { %v1102_v9 = vpop.permute.xlu2 %1101 }
 0x249   : > { %v1133_v31 = vrot.slane %v1102_v9, 4 }
 0x250   : > { %v1108_v49 = vpop.permute.xlu2 %1107  ;;  %v1106_v53 = vpop.permute.xlu1 %1105 }
 0x251   : > { %v1136_v60 = vrot.slane %v1108_v49, 4  ;;  %v1135_v45 = vrot.slane %v1106_v53, 4  ;;  %v299_v49 = vmul.f32 %v3352_v48, %v283_v41 }
 0x253   : > { %v1152_v24 = vsel %vm279_vm0, %v1135_v45, %v1136_v60  ;;  %v276_v60 = vrot.slane %v250_v61, 4 }
 0x254   : > { %v1153_v8 = vsel %vm1150_vm8, %v1106_v53, %v1152_v24  ;;  %v531_v24 = vadd.f32 %v511_v56, %v299_v49 }
 0x255   : > { %v3313_v38 = vadd.f32 %v1153_v8, %v963_v15 }
 0x258   : > { %v3319_v2 = vpop.permute.xlu2 %1113  ;;  %v1112_v50 = vpop.permute.xlu1 %1111 }
 0x259   : > { %v1138_v25 = vrot.slane %v1112_v50, 4  ;;  %v931_v50 = vrot.slane %v3125_v39, 4  ;;  %v1139_v57 = vrot.slane %v3319_v2, 4 }
 0x25f   : > { %v1104_v32 = vpop.permute.xlu0 %1103 }
 0x260   : > { %v1134_v22 = vrot.slane %v1104_v32, 4  ;;  %v1120_v63 = vpop.permute.xlu2 %1119  ;;  %v1118_v33 = vpop.permute.xlu1 %1117 }
 0x261   : > { %v1142_v17 = vrot.slane %v1120_v63, 4  ;;  %v1141_v0 = vrot.slane %v1118_v33, 4 }
 0x262   : > { %v1149_v7 = vsel %vm279_vm0, %v1133_v31, %v1134_v22 }
 0x263   : > { %v1151_v3 = vsel %vm1150_vm8, %v1102_v9, %v1149_v7  ;;  %v1158_v30 = vsel %vm279_vm0, %v1141_v0, %v1142_v17  ;;  %v706_v9 = vrot.slane %v2914_v19, 4 }
 0x264   : > { %v3339_v42 = vadd.f32 %v1151_v3, %v962_v18  ;;  %v1159_v44 = vsel %vm1150_vm8, %v1118_v33, %v1158_v30  ;;  %v948_v33 = vsel %vm279_vm0, %v931_v50, %v932_v6 }
 0x265   : > { %v3347_v47 = vadd.f32 %v1159_v44, %v3085_v37  ;;  %v249_v37 = vld [vmem:[%s3967_s1 + $0x190] sm:$0xf]  ;;  %v722_v15 = vsel %vm279_vm0, %v705_v20, %v706_v9 }
 0x266   : > { %v285_v8 = vsel %vm279_vm0, %v249_v37, %v276_v60  ;;  %v723_v13 = vsel %vm716_vm5, %v2910_v16, %v722_v15 }
 0x267   : > { %v1110_v53 = vpop.permute.xlu0 %1109  ;;  %v301_v4 = vmul.f32 %v3352_v48, %v285_v8  ;;  %v743_v62 = vadd.f32 %v723_v13, %v531_v24 }
 0x268   : > { %v1137_v45 = vrot.slane %v1110_v53, 4  ;;  %v1126_v55 = vpop.permute.xlu2 %1125  ;;  %v1124_v28 = vpop.permute.xlu1 %1123 }
 0x269   : > { %v965_v16 = vadd.f32 %v3107_v51, %v743_v62  ;;  %v533_v63 = vadd.f32 %v2985_v36, %v301_v4  ;;  %v1144_v51 = vrot.slane %v1124_v28, 4 }
 0x26a   : > { %v1154_v19 = vsel %vm279_vm0, %v1137_v45, %v1138_v25  ;;  %v1145_v25 = vrot.slane %v1126_v55, 4 }
 0x26b   : > { %v1155_v58 = vsel %vm1150_vm8, %v1110_v53, %v1154_v19 }
 0x26c   : > { %v3365_v5 = vadd.f32 %v1155_v58, %v3091_v40  ;;  %v710_v40 = vrot.slane %v2893_v1, 4 }
 0x26e   : > { %v726_v31 = vsel %vm279_vm0, %v709_v11, %v710_v40 }
 0x26f   : > { %v1116_v23 = vpop.permute.xlu0 %1115  ;;  %v727_v17 = vsel %vm716_vm5, %v2930_v29, %v726_v31  ;;  %v1408_v31 = vld [vmem:[%s3967_s1 + $0x80] sm:$0xf]  ;;  %vm2289_vm5 = vcmask 1044484  }
 0x270   : > { %v1140_v14 = vrot.slane %v1116_v23, 4  ;;  %v1132_v21 = vpop.permute.xlu2 %1131  ;;  %v1130_v10 = vpop.permute.xlu1 %1129  ;;  %v745_v18 = vadd.f32 %v727_v17, %v533_v63 }
 0x271   : > { %v1148_v32 = vrot.slane %v1132_v21, 4  ;;  %v1147_v43 = vrot.slane %v1130_v10, 4 }
 0x272   : > { %v1156_v12 = vsel %vm279_vm0, %v1139_v57, %v1140_v14 }
 0x273   : > { %v1157_v22 = vsel %vm1150_vm8, %v3319_v2, %v1156_v12  ;;  %v1164_v52 = vsel %vm279_vm0, %v1147_v43, %v1148_v32  ;;  %v949_v2 = vsel %vm938_vm6, %v3125_v39, %v948_v33  ;;  %v1409_v43 = vld [vmem:[%s3967_s1 + $0x88] sm:$0xf]  ;;  %vm2292_vm6 = vcmask 1045509  }
 0x274   : > { %v3383_v27 = vadd.f32 %v1157_v22, %v965_v16  ;;  %v1165_v1 = vsel %vm1150_vm8, %v1130_v10, %v1164_v52  ;;  %v967_v3 = vadd.f32 %v949_v2, %v745_v18  ;;  %v1439_v12 = vrot.slane %v1409_v43, 4  ;;  %v1414_v18 = vld [vmem:[%s3967_s1 + $0x170] sm:$0xf] }
 0x275   : > { %v3387_v54 = vadd.f32 %v1165_v1, %v3122_v59 }
 0x276   : > { %v1447_v33 = vsel %vm279_vm0, %v1408_v31, %v1439_v12 }
 0x277   : > { %v1122_v0 = vpop.permute.xlu0 %1121 }
 0x278   : > { %v1143_v7 = vrot.slane %v1122_v0, 4  ;;  %v1245_v36 = vpop.permute.xlu1 %1244  ;;  %v1247_v44 = vpop.permute.xlu2 %1246 }
 0x279   : > { %v1259_v26 = vrot.slane %v1245_v36, 4  ;;  %v1260_v39 = vrot.slane %v1247_v44, 4 }
 0x27a   : > { %v1160_v30 = vsel %vm279_vm0, %v1143_v7, %v1144_v51  ;;  %v1415_v51 = vld [vmem:[%s3967_s1 + $0x178] sm:$0xf] }
 0x27b   : > { %v1161_v41 = vsel %vm1150_vm8, %v1122_v0, %v1160_v30  ;;  %v1268_v59 = vsel %vm1266_vm9, %v1259_v26, %v1245_v36  ;;  %v1296_v53 = vmul.f32 %v1260_v39, %v3136_v34  ;;  %v1294_v50 = vmul.f32 %v1259_v26, %v3136_v34  ;;  %v1407_v7 = vld [vmem:[%s3967_s1 + $0x38] sm:$0xf] }
 0x27c   : > { %v3396_v35 = vadd.f32 %v1161_v41, %v967_v3  ;;  %v1293_v29 = vmul.f32 %v3352_v48, %v1268_v59  ;;  %v1442_v17 = vrot.slane %v1415_v51, 4  ;;  %v1421_v3 = vld [vmem:[%s3967_s1 + $0x268] sm:$0xf]  ;;  %v1438_v30 = vrot.slane %v1407_v7, 4  ;;  %v1406_v41 = vld [vmem:[%s3967_s1 + $0x30] sm:$0xf] }
 0x27d   : > { %v1445_v59 = vrot.slane %v1421_v3, 4 }
 0x27e   : > { %1327 = vrot.lane.b32.xlu1 %v1293_v29, %s2520_s16  ;;  %v1450_v26 = vsel %vm279_vm0, %v1414_v18, %v1442_v17  ;;  %v1413_v29 = vld [vmem:[%s3967_s1 + $0x128] sm:$0xf] }
 0x27f   : > { %v1128_v61 = vpop.permute.xlu0 %1127 }
 0x280   : > { %v1146_v9 = vrot.slane %v1128_v61, 4  ;;  %v1251_v20 = vpop.permute.xlu1 %1250  ;;  %v1253_v13 = vpop.permute.xlu2 %1252 }
 0x281   : > { %v1262_v60 = vrot.slane %v1251_v20, 4 }
 0x282   : > { %v1162_v49 = vsel %vm279_vm0, %v1145_v25, %v1146_v9  ;;  %v1411_v25 = vld [vmem:[%s3967_s1 + $0xd8] sm:$0xf]  ;;  %v1441_v9 = vrot.slane %v1413_v29, 4 }
 0x283   : > { %v1163_v56 = vsel %vm1150_vm8, %v1126_v55, %v1162_v49  ;;  %v1271_v37 = vsel %vm1266_vm9, %v1262_v60, %v1251_v20  ;;  %v1269_v55 = vsel %vm1266_vm9, %v1260_v39, %v1247_v44  ;;  %v1300_v63 = vmul.f32 %v1262_v60, %v3136_v34  ;;  %v1412_v20 = vld [vmem:[%s3967_s1 + $0x120] sm:$0xf]  ;;  %v1419_v60 = vld [vmem:[%s3967_s1 + $0x218] sm:$0xf] }
 0x284   : > { %v3404_v45 = vadd.f32 %v1163_v56, %v3152_v46  ;;  %v1299_v58 = vmul.f32 %v3352_v48, %v1271_v37  ;;  %v1263_v46 = vrot.slane %v1253_v13, 4  ;;  %v1295_v62 = vmul.f32 %v3352_v48, %v1269_v55 }
 0x285   : > { %v1446_v44 = vsel %vm279_vm0, %v1406_v41, %v1438_v30  ;;  %v1440_v49 = vrot.slane %v1411_v25, 4  ;;  %v1444_v37 = vrot.slane %v1419_v60, 4 }
 0x286   : > { %1333 = vrot.lane.b32.xlu1 %v1296_v53, %s2520_s16  ;;  %v1302_v23 = vmul.f32 %v1263_v46, %v3136_v34  ;;  %v1272_v16 = vsel %vm1266_vm9, %v1263_v46, %v1253_v13  ;;  %v1449_v53 = vsel %vm279_vm0, %v1412_v20, %v1441_v9 }
 0x287   : > { %v1243_v28 = vpop.permute.xlu0 %1242  ;;  %v1301_v52 = vmul.f32 %v3352_v48, %v1272_v16 }
 0x288   : > { %v1258_v19 = vrot.slane %v1243_v28, 4  ;;  %v1257_v11 = vpop.permute.xlu1 %1256 }
 0x289   : > { %v1265_v6 = vrot.slane %v1257_v11, 4 }
 0x28a   : > { %v1267_v15 = vsel %vm1266_vm9, %v1258_v19, %v1243_v28  ;;  %v1292_v24 = vmul.f32 %v1258_v19, %v3136_v34  ;;  %v1417_v28 = vld [vmem:[%s3967_s1 + $0x1c8] sm:$0xf]  ;;  %v1418_v19 = vld [vmem:[%s3967_s1 + $0x210] sm:$0xf] }
 0x28b   : > { %v1291_v8 = vmul.f32 %v3352_v48, %v1267_v15  ;;  %v1274_v14 = vsel %vm1266_vm9, %v1265_v6, %v1257_v11  ;;  %v1306_v39 = vmul.f32 %v1265_v6, %v3136_v34  ;;  %v1443_v15 = vrot.slane %v1417_v28, 4 }
 0x28c   : > { %1325 = vrot.lane.b32.xlu0 %v1292_v24, %s2520_s16  ;;  %v1305_v40 = vmul.f32 %v3352_v48, %v1274_v14  ;;  %v1416_v24 = vld [vmem:[%s3967_s1 + $0x1c0] sm:$0xf] }
 0x28d   : > { %1323 = vrot.lane.b32.xlu2 %v1291_v8, %s2520_s16  ;;  %v1451_v8 = vsel %vm279_vm0, %v1416_v24, %v1443_v15  ;;  %v3548_v24 = vld [vmem:[%s2737_s20 + $0x8] sm:$0xf] }
 0x28e   : > { %1339 = vrot.lane.b32.xlu1 %v1299_v58, %s2520_s16  ;;  %v1452_v58 = vsel %vm279_vm0, %v1418_v19, %v1444_v37 }
 0x28f   : > { %v1249_v4 = vpop.permute.xlu0 %1248 }
 0x290   : > { %v1261_v57 = vrot.slane %v1249_v4, 4 }
 0x292   : > { %v1270_v21 = vsel %vm1266_vm9, %v1261_v57, %v1249_v4  ;;  %v1298_v10 = vmul.f32 %v1261_v57, %v3136_v34 }
 0x293   : > { %v1297_v32 = vmul.f32 %v3352_v48, %v1270_v21 }
 0x294   : > { %1331 = vrot.lane.b32.xlu0 %v1295_v62, %s2520_s16 }
 0x295   : > { %1329 = vrot.lane.b32.xlu2 %v1294_v50, %s2520_s16 }
 0x296   : > { %1345 = vrot.lane.b32.xlu1 %v1302_v23, %s2520_s16 }
 0x297   : > { %v1255_v22 = vpop.permute.xlu0 %1254 }
 0x298   : > { %v1264_v1 = vrot.slane %v1255_v22, 4 }
 0x29a   : > { %v1273_v2 = vsel %vm1266_vm9, %v1264_v1, %v1255_v22  ;;  %v1304_v0 = vmul.f32 %v1264_v1, %v3136_v34  ;;  %v1410_v34 = vld [vmem:[%s3967_s1 + $0xd0] sm:$0xf] }
 0x29b   : > { %v1303_v36 = vmul.f32 %v3352_v48, %v1273_v2  ;;  %v1420_v48 = vld [vmem:[%s3967_s1 + $0x260] sm:$0xf]  ;;  %v1448_v56 = vsel %vm279_vm0, %v1410_v34, %v1440_v49 }
 0x29c   : > { %1337 = vrot.lane.b32.xlu0 %v1298_v10, %s2520_s16  ;;  %v1453_v61 = vsel %vm279_vm0, %v1420_v48, %v1445_v59  ;;  %v3538_v34 = vld [vmem:[%s2737_s20] sm:$0xff] }
 0x29d   : > { %1335 = vrot.lane.b32.xlu2 %v1297_v32, %s2520_s16 }
 0x29e   : > { %1351 = vrot.lane.b32.xlu1 %v1305_v40, %s2520_s16 }
 0x2a4   : > { %1343 = vrot.lane.b32.xlu0 %v1301_v52, %s2520_s16 }
 0x2a5   : > { %1341 = vrot.lane.b32.xlu2 %v1300_v63, %s2520_s16 }
 0x2a6   : > { %1456 = vrot.lane.b32.xlu1 %v1447_v33, %s2521_s22 }
 0x2ac   : > { %1349 = vrot.lane.b32.xlu0 %v1304_v0, %s2520_s16 }
 0x2ad   : > { %1347 = vrot.lane.b32.xlu2 %v1303_v36, %s2520_s16 }
 0x2ae   : > { %1462 = vrot.lane.b32.xlu1 %v1450_v26, %s2521_s22 }
 0x2b4   : > { %1454 = vrot.lane.b32.xlu0 %v1446_v44, %s2521_s22 }
 0x2b5   : > { %1353 = vrot.lane.b32.xlu2 %v1306_v39, %s2520_s16 }
 0x2b6   : > { %1468 = vrot.lane.b32.xlu1 %v1453_v61, %s2521_s22 }
 0x2bc   : > { %1460 = vrot.lane.b32.xlu0 %v1449_v53, %s2521_s22 }
 0x2bd   : > { %1458 = vrot.lane.b32.xlu2 %v1448_v56, %s2521_s22 }
 0x2c4   : > { %1466 = vrot.lane.b32.xlu0 %v1452_v58, %s2521_s22 }
 0x2c5   : > { %1464 = vrot.lane.b32.xlu2 %v1451_v8, %s2521_s22  ;;  %s2522_s22 = smov 96  }
 0x2e7   : > { %v1324_v13 = vpop.permute.xlu2 %1323 }
 0x2e8   : > { %v1355_v21 = vrot.slane %v1324_v13, 4 }
 0x2ef   : > { %v1330_v46 = vpop.permute.xlu2 %1329 }
 0x2f0   : > { %v1328_v55 = vpop.permute.xlu1 %1327  ;;  %v1358_v11 = vrot.slane %v1330_v46, 4 }
 0x2f1   : > { %v1357_v4 = vrot.slane %v1328_v55, 4 }
 0x2f3   : > { %v1374_v62 = vsel %vm279_vm0, %v1357_v4, %v1358_v11  ;;  %v1626_v4 = vld [vmem:[%s3967_s1 + $0x1c0] sm:$0xf0] }
 0x2f4   : > { %v1375_v23 = vsel %vm1372_vm10, %v1328_v55, %v1374_v62  ;;  %v1627_v62 = vld [vmem:[%s3967_s1 + $0x1c8] sm:$0xf0] }
 0x2f5   : > { %v3509_v50 = vadd.f32 %v1375_v23, %v3313_v38  ;;  %v1655_v23 = vld [vmem:[#allocation1 + $0x11] ss:$2 sm:$0xff] }
 0x2f6   : > { %1667 = vst.sshfl [vmem:[#allocation1 + $0x10] sm:$0xff pattern:$0x75316420] %v1626_v4 }
 0x2f7   : > { %v1336_v6 = vpop.permute.xlu2 %1335  ;;  %1668 = vst.sshfl [vmem:[#allocation1 + $0x18] sm:$0xff pattern:$0x75316420] %v1627_v62 }
 0x2f8   : > { %v1334_v57 = vpop.permute.xlu1 %1333 }
 0x2f9   : > { %v1360_v63 = vrot.slane %v1334_v57, 4 }
 0x2fe   : > { %v1326_v14 = vpop.permute.xlu0 %1325  ;;  %v1669_v4 = vld [vmem:[#allocation1 + $0x11] ss:$2 sm:$0xff] }
 0x2ff   : > { %v1356_v10 = vrot.slane %v1326_v14, 4  ;;  %v1342_v40 = vpop.permute.xlu2 %1341 }
 0x300   : > { %v1340_v32 = vpop.permute.xlu1 %1339  ;;  %v1364_v16 = vrot.slane %v1342_v40, 4 }
 0x301   : > { %v1371_v43 = vsel %vm279_vm0, %v1355_v21, %v1356_v10  ;;  %v1363_v12 = vrot.slane %v1340_v32, 4 }
 0x302   : > { %v1373_v31 = vsel %vm1372_vm10, %v1324_v13, %v1371_v43  ;;  %v1624_v43 = vld [vmem:[%s3967_s1 + $0x170] sm:$0xf0] }
 0x303   : > { %v1380_v22 = vsel %vm279_vm0, %v1363_v12, %v1364_v16  ;;  %v3515_v52 = vadd.f32 %v1373_v31, %v3339_v42  ;;  %v1361_v42 = vrot.slane %v1336_v6, 4  ;;  %v1625_v16 = vld [vmem:[%s3967_s1 + $0x178] sm:$0xf0]  ;;  %v1651_v12 = vld [vmem:[#allocation1 + $0x1] ss:$2 sm:$0xff] }
 0x304   : > { %v1381_v38 = vsel %vm1372_vm10, %v1340_v32, %v1380_v22  ;;  %1664 = vst.sshfl [vmem:[#allocation1] sm:$0xff pattern:$0x75316420] %v1624_v43 }
 0x305   : > { %v3519_v33 = vadd.f32 %v1381_v38, %v3347_v47  ;;  %1665 = vst.sshfl [vmem:[#allocation1 + $0x8] sm:$0xff pattern:$0x75316420] %v1625_v16 }
 0x306   : > { %v1332_v1 = vpop.permute.xlu0 %1331 }
 0x307   : > { %v1359_v51 = vrot.slane %v1332_v1, 4  ;;  %v1348_v17 = vpop.permute.xlu2 %1347 }
 0x308   : > { %v1346_v2 = vpop.permute.xlu1 %1345  ;;  %v1367_v15 = vrot.slane %v1348_v17, 4 }
 0x309   : > { %v1376_v0 = vsel %vm279_vm0, %v1359_v51, %v1360_v63  ;;  %v1366_v39 = vrot.slane %v1346_v2, 4 }
 0x30a   : > { %v1377_v18 = vsel %vm1372_vm10, %v1332_v1, %v1376_v0 }
 0x30b   : > { %v3524_v7 = vadd.f32 %v1377_v18, %v3365_v5  ;;  %v1630_v18 = vld [vmem:[%s3967_s1 + $0x260] sm:$0xf0] }
 0x30e   : > { %v1338_v36 = vpop.permute.xlu0 %1337 }
 0x30f   : > { %v1362_v26 = vrot.slane %v1338_v36, 4  ;;  %v1354_v3 = vpop.permute.xlu2 %1353  ;;  %v1631_v36 = vld [vmem:[%s3967_s1 + $0x268] sm:$0xf0] }
 0x310   : > { %v1352_v30 = vpop.permute.xlu1 %1351  ;;  %v1370_v41 = vrot.slane %v1354_v3, 4 }
 0x311   : > { %v1378_v47 = vsel %vm279_vm0, %v1361_v42, %v1362_v26  ;;  %v1369_v59 = vrot.slane %v1352_v30, 4  ;;  %v1663_v42 = vld [vmem:[#allocation1 + $0x31] ss:$2 sm:$0xff] }
 0x312   : > { %v1379_v48 = vsel %vm1372_vm10, %v1336_v6, %v1378_v47  ;;  %1673 = vst.sshfl [vmem:[#allocation1 + $0x30] sm:$0xff pattern:$0x75316420] %v1630_v18 }
 0x313   : > { %v3529_v44 = vadd.f32 %v1379_v48, %v3383_v27  ;;  %v1386_v29 = vsel %vm279_vm0, %v1369_v59, %v1370_v41  ;;  %1674 = vst.sshfl [vmem:[#allocation1 + $0x38] sm:$0xff pattern:$0x75316420] %v1631_v36  ;;  %v1852_v36 = vld [vmem:[%s3967_s1 + $0x220] sm:$0xf] }
 0x314   : > { %v1387_v5 = vsel %vm1372_vm10, %v1352_v30, %v1386_v29 }
 0x315   : > { %v3534_v61 = vadd.f32 %v1387_v5, %v3387_v54 }
 0x316   : > { %v1344_v25 = vpop.permute.xlu0 %1343 }
 0x317   : > { %v1365_v9 = vrot.slane %v1344_v25, 4  ;;  %v1459_v28 = vpop.permute.xlu2 %1458 }
 0x318   : > { %v1457_v20 = vpop.permute.xlu1 %1456  ;;  %v1472_v19 = vrot.slane %v1459_v28, 4 }
 0x319   : > { %v1382_v49 = vsel %vm279_vm0, %v1365_v9, %v1366_v39  ;;  %v1471_v53 = vrot.slane %v1457_v20, 4  ;;  %v1629_v9 = vld [vmem:[%s3967_s1 + $0x218] sm:$0xf0] }
 0x31a   : > { %v1383_v27 = vsel %vm1372_vm10, %v1344_v25, %v1382_v49  ;;  %v1508_v46 = vmul.f32 %v1472_v19, %v3548_v24  ;;  %v1481_v31 = vsel %vm1478_vm11, %v1472_v19, %v1459_v28  ;;  %v1628_v25 = vld [vmem:[%s3967_s1 + $0x210] sm:$0xf0]  ;;  %v1843_v28 = vld [vmem:[%s3967_s1 + $0x98] sm:$0xf] }
 0x31b   : > { %v3542_v56 = vadd.f32 %v1383_v27, %v3396_v35  ;;  %v1480_v60 = vsel %vm1478_vm11, %v1471_v53, %v1457_v20  ;;  %v1507_v1 = vmul.f32 %v1481_v31, %v3538_v34  ;;  %v1506_v51 = vmul.f32 %v1471_v53, %v3548_v24  ;;  %v1659_v20 = vld [vmem:[#allocation1 + $0x21] ss:$2 sm:$0xff]  ;;  %v1675_v16 = vld [vmem:[#allocation1 + $0x31] ss:$2 sm:$0xff] }
 0x31c   : > { %v1505_v54 = vmul.f32 %v1480_v60, %v3538_v34  ;;  %1670 = vst.sshfl [vmem:[#allocation1 + $0x20] sm:$0xff pattern:$0x75316420] %v1628_v25  ;;  %v1666_v60 = vld [vmem:[#allocation1 + $0x1] ss:$2 sm:$0xff] }
 0x31d   : > { %1671 = vst.sshfl [vmem:[#allocation1 + $0x28] sm:$0xff pattern:$0x75316420] %v1629_v9  ;;  %v1848_v31 = vld [vmem:[%s3967_s1 + $0x180] sm:$0xf] }
 0x31e   : > { %v1350_v37 = vpop.permute.xlu0 %1349  ;;  %1539 = vrot.lane.b32.xlu1 %v1505_v54, %s2522_s22  ;;  %v1873_v54 = vrot.slane %v1843_v28, 4 }
 0x31f   : > { %v1368_v58 = vrot.slane %v1350_v37, 4  ;;  %v1465_v32 = vpop.permute.xlu2 %1464  ;;  %v1842_v37 = vld [vmem:[%s3967_s1 + $0x90] sm:$0xf] }
 0x320   : > { %v1463_v8 = vpop.permute.xlu1 %1462  ;;  %v1475_v22 = vrot.slane %v1465_v32, 4 }
 0x321   : > { %v1384_v13 = vsel %vm279_vm0, %v1367_v15, %v1368_v58  ;;  %v1474_v11 = vrot.slane %v1463_v8, 4  ;;  %v1881_v15 = vsel %vm279_vm0, %v1842_v37, %v1873_v54  ;;  %v1841_v58 = vld [vmem:[%s3967_s1 + $0x48] sm:$0xf] }
 0x322   : > { %v1385_v35 = vsel %vm1372_vm10, %v1348_v17, %v1384_v13  ;;  %v1514_v17 = vmul.f32 %v1475_v22, %v3548_v24  ;;  %v1484_v59 = vsel %vm1478_vm11, %v1475_v22, %v1465_v32  ;;  %v1872_v13 = vrot.slane %v1841_v58, 4 }
 0x323   : > { %v3554_v55 = vadd.f32 %v1385_v35, %v3404_v45  ;;  %v1483_v14 = vsel %vm1478_vm11, %v1474_v11, %v1463_v8  ;;  %v1513_v29 = vmul.f32 %v1484_v59, %v3538_v34  ;;  %v1512_v5 = vmul.f32 %v1474_v11, %v3548_v24  ;;  %v1840_v35 = vld [vmem:[%s3967_s1 + $0x40] sm:$0xf]  ;;  %v1847_v11 = vld [vmem:[%s3967_s1 + $0x138] sm:$0xf] }
 0x324   : > { %v1511_v40 = vmul.f32 %v1483_v14, %v3538_v34  ;;  %v1672_v8 = vld [vmem:[#allocation1 + $0x21] ss:$2 sm:$0xff]  ;;  %v1875_v62 = vrot.slane %v1847_v11, 4 }
 0x325   : > { %v1844_v14 = vld [vmem:[%s3967_s1 + $0xe0] sm:$0xf] }
 0x326   : > { %v1455_v6 = vpop.permute.xlu0 %1454  ;;  %1545 = vrot.lane.b32.xlu1 %v1508_v46, %s2522_s22  ;;  %v1880_v46 = vsel %vm279_vm0, %v1840_v35, %v1872_v13 }
 0x327   : > { %v1470_v57 = vrot.slane %v1455_v6, 4 }
 0x328   : > { %v1469_v63 = vpop.permute.xlu1 %1468 }
 0x329   : > { %v1479_v45 = vsel %vm1478_vm11, %v1470_v57, %v1455_v6  ;;  %v1504_v21 = vmul.f32 %v1470_v57, %v3548_v24  ;;  %v1477_v0 = vrot.slane %v1469_v63, 4  ;;  %v1845_v6 = vld [vmem:[%s3967_s1 + $0xe8] sm:$0xf] }
 0x32a   : > { %v1503_v10 = vmul.f32 %v1479_v45, %v3538_v34  ;;  %v1874_v57 = vrot.slane %v1845_v6, 4  ;;  %v1850_v45 = vld [vmem:[%s3967_s1 + $0x1d0] sm:$0xf] }
 0x32b   : > { %1537 = vrot.lane.b32.xlu0 %v1504_v21, %s2522_s22  ;;  %v1486_v30 = vsel %vm1478_vm11, %v1477_v0, %v1469_v63  ;;  %v1518_v19 = vmul.f32 %v1477_v0, %v3548_v24  ;;  %v1851_v21 = vld [vmem:[%s3967_s1 + $0x1d8] sm:$0xf]  ;;  %v1853_v0 = vld [vmem:[%s3967_s1 + $0x228] sm:$0xf] }
 0x32c   : > { %1535 = vrot.lane.b32.xlu2 %v1503_v10, %s2522_s22  ;;  %v1517_v41 = vmul.f32 %v1486_v30, %v3538_v34  ;;  %v1882_v32 = vsel %vm279_vm0, %v1844_v14, %v1874_v57  ;;  %v1855_v63 = vld [vmem:[%s3967_s1 + $0x278] sm:$0xf]  ;;  %v1878_v18 = vrot.slane %v1853_v0, 4 }
 0x32e   : > { %1551 = vrot.lane.b32.xlu1 %v1511_v40, %s2522_s22  ;;  %v1461_v38 = vpop.permute.xlu0 %1460  ;;  %v1877_v40 = vrot.slane %v1851_v21, 4 }
 0x32f   : > { %v1473_v2 = vrot.slane %v1461_v38, 4 }
 0x330   : > { %v1885_v43 = vsel %vm279_vm0, %v1850_v45, %v1877_v40 }
 0x331   : > { %v1482_v26 = vsel %vm1478_vm11, %v1473_v2, %v1461_v38  ;;  %v1510_v3 = vmul.f32 %v1473_v2, %v3548_v24 }
 0x332   : > { %v1509_v47 = vmul.f32 %v1482_v26, %v3538_v34 }
 0x333   : > { %1543 = vrot.lane.b32.xlu0 %v1507_v1, %s2522_s22  ;;  %v1879_v1 = vrot.slane %v1855_v63, 4 }
 0x334   : > { %1541 = vrot.lane.b32.xlu2 %v1506_v51, %s2522_s22  ;;  %v1854_v51 = vld [vmem:[%s3967_s1 + $0x270] sm:$0xf] }
 0x336   : > { %1557 = vrot.lane.b32.xlu1 %v1514_v17, %s2522_s22  ;;  %v1467_v48 = vpop.permute.xlu0 %1466  ;;  %v1887_v17 = vsel %vm279_vm0, %v1854_v51, %v1879_v1 }
 0x337   : > { %v1476_v39 = vrot.slane %v1467_v48, 4 }
 0x339   : > { %v1485_v49 = vsel %vm1478_vm11, %v1476_v39, %v1467_v48  ;;  %v1516_v53 = vmul.f32 %v1476_v39, %v3548_v24 }
 0x33a   : > { %v1515_v27 = vmul.f32 %v1485_v49, %v3538_v34 }
 0x33b   : > { %1549 = vrot.lane.b32.xlu0 %v1510_v3, %s2522_s22 }
 0x33c   : > { %1547 = vrot.lane.b32.xlu2 %v1509_v47, %s2522_s22 }
 0x33e   : > { %1563 = vrot.lane.b32.xlu1 %v1517_v41, %s2522_s22 }
 0x343   : > { %1555 = vrot.lane.b32.xlu0 %v1513_v29, %s2522_s22 }
 0x344   : > { %1553 = vrot.lane.b32.xlu2 %v1512_v5, %s2522_s22 }
 0x346   : > { %1678 = vrot.lane.b32.xlu1 %v1655_v23, %s2523_s30  ;;  %v1846_v23 = vld [vmem:[%s3967_s1 + $0x130] sm:$0xf] }
 0x347   : > { %v1883_v10 = vsel %vm279_vm0, %v1846_v23, %v1875_v62 }
 0x34b   : > { %1561 = vrot.lane.b32.xlu0 %v1516_v53, %s2522_s22 }
 0x34c   : > { %1559 = vrot.lane.b32.xlu2 %v1515_v27, %s2522_s22 }
 0x34e   : > { %1684 = vrot.lane.b32.xlu1 %v1666_v60, %s2523_s30 }
 0x353   : > { %1676 = vrot.lane.b32.xlu0 %v1651_v12, %s2523_s30  ;;  %v1849_v12 = vld [vmem:[%s3967_s1 + $0x188] sm:$0xf] }
 0x354   : > { %1565 = vrot.lane.b32.xlu2 %v1518_v19, %s2522_s22  ;;  %v1876_v22 = vrot.slane %v1849_v12, 4 }
 0x356   : > { %1890 = vrot.lane.b32.xlu1 %v1881_v15, %s2524_s29  ;;  %v1884_v38 = vsel %vm279_vm0, %v1848_v31, %v1876_v22 }
 0x35b   : > { %1682 = vrot.lane.b32.xlu0 %v1663_v42, %s2523_s30  ;;  %v1886_v42 = vsel %vm279_vm0, %v1852_v36, %v1878_v18 }
 0x35c   : > { %1680 = vrot.lane.b32.xlu2 %v1659_v20, %s2523_s30 }
 0x35e   : > { %1688 = vrot.lane.b32.xlu1 %v1672_v8, %s2523_s30 }
 0x363   : > { %1888 = vrot.lane.b32.xlu0 %v1880_v46, %s2524_s29 }
 0x364   : > { %1686 = vrot.lane.b32.xlu2 %v1669_v4, %s2523_s30 }
 0x366   : > { %1898 = vrot.lane.b32.xlu1 %v1885_v43, %s2524_s29 }
 0x36b   : > { %1894 = vrot.lane.b32.xlu0 %v1883_v10, %s2524_s29 }
 0x36c   : > { %1892 = vrot.lane.b32.xlu2 %v1882_v32, %s2524_s29 }
 0x373   : > { %1690 = vrot.lane.b32.xlu0 %v1675_v16, %s2523_s30 }
 0x374   : > { %1896 = vrot.lane.b32.xlu2 %v1884_v38, %s2524_s29 }
 0x37b   : > { %1902 = vrot.lane.b32.xlu0 %v1887_v17, %s2524_s29 }
 0x37c   : > { %1900 = vrot.lane.b32.xlu2 %v1886_v42, %s2524_s29  ;;  %s2525_s29 = smov 95  }
 0x386   : > { %v1536_v2 = vpop.permute.xlu2 %1535 }
 0x387   : > { %v1567_v25 = vrot.slane %v1536_v2, 4 }
 0x38e   : > { %v1542_v26 = vpop.permute.xlu2 %1541 }
 0x38f   : > { %v1570_v30 = vrot.slane %v1542_v26, 4 }
 0x390   : > { %v1540_v3 = vpop.permute.xlu1 %1539 }
 0x391   : > { %v1569_v47 = vrot.slane %v1540_v3, 4 }
 0x393   : > { %v1586_v41 = vsel %vm279_vm0, %v1569_v47, %v1570_v30 }
 0x394   : > { %v1587_v59 = vsel %vm1584_vm12, %v1540_v3, %v1586_v41 }
 0x395   : > { %v3691_v48 = vadd.f32 %v1587_v59, %v3509_v50 }
 0x396   : > { %v1548_v29 = vpop.permute.xlu2 %1547 }
 0x397   : > { %v1573_v62 = vrot.slane %v1548_v29, 4 }
 0x398   : > { %v1546_v5 = vpop.permute.xlu1 %1545 }
 0x399   : > { %v1572_v50 = vrot.slane %v1546_v5, 4 }
 0x39d   : > { %v1538_v39 = vpop.permute.xlu0 %1537 }
 0x39e   : > { %v1568_v9 = vrot.slane %v1538_v39, 4  ;;  %v1554_v20 = vpop.permute.xlu2 %1553 }
 0x39f   : > { %v1576_v27 = vrot.slane %v1554_v20, 4 }
 0x3a0   : > { %v1583_v49 = vsel %vm279_vm0, %v1567_v25, %v1568_v9  ;;  %v1552_v53 = vpop.permute.xlu1 %1551 }
 0x3a1   : > { %v1575_v60 = vrot.slane %v1552_v53, 4  ;;  %v1585_v28 = vsel %vm1584_vm12, %v1536_v2, %v1583_v49 }
 0x3a2   : > { %v3696_v54 = vadd.f32 %v1585_v28, %v3515_v52 }
 0x3a3   : > { %v1592_v37 = vsel %vm279_vm0, %v1575_v60, %v1576_v27  ;;  %v3747_v60 = vld [vmem:[%s2737_s20 + $0x8] sm:$0xf] }
 0x3a4   : > { %v1593_v19 = vsel %vm1584_vm12, %v1552_v53, %v1592_v37 }
 0x3a5   : > { %v3701_v15 = vadd.f32 %v1593_v19, %v3519_v33  ;;  %v1544_v58 = vpop.permute.xlu0 %1543 }
 0x3a6   : > { %v1571_v8 = vrot.slane %v1544_v58, 4  ;;  %v1560_v13 = vpop.permute.xlu2 %1559 }
 0x3a8   : > { %v1588_v35 = vsel %vm279_vm0, %v1571_v8, %v1572_v50  ;;  %v1558_v46 = vpop.permute.xlu1 %1557 }
 0x3a9   : > { %v1589_v11 = vsel %vm1584_vm12, %v1544_v58, %v1588_v35  ;;  %v1578_v32 = vrot.slane %v1558_v46, 4 }
 0x3aa   : > { %v3706_v4 = vadd.f32 %v1589_v11, %v3524_v7 }
 0x3ad   : > { %v1550_v52 = vpop.permute.xlu0 %1549 }
 0x3ae   : > { %v1574_v23 = vrot.slane %v1550_v52, 4  ;;  %v1566_v6 = vpop.permute.xlu2 %1565 }
 0x3af   : > { %v1582_v45 = vrot.slane %v1566_v6, 4 }
 0x3b0   : > { %v1590_v57 = vsel %vm279_vm0, %v1573_v62, %v1574_v23  ;;  %v1564_v14 = vpop.permute.xlu1 %1563 }
 0x3b1   : > { %v1591_v33 = vsel %vm1584_vm12, %v1548_v29, %v1590_v57  ;;  %v1581_v21 = vrot.slane %v1564_v14, 4 }
 0x3b2   : > { %v3711_v10 = vadd.f32 %v1591_v33, %v3529_v44 }
 0x3b3   : > { %v1598_v40 = vsel %vm279_vm0, %v1581_v21, %v1582_v45 }
 0x3b4   : > { %v1599_v7 = vsel %vm1584_vm12, %v1564_v14, %v1598_v40 }
 0x3b5   : > { %v3716_v43 = vadd.f32 %v1599_v7, %v3534_v61  ;;  %v1556_v16 = vpop.permute.xlu0 %1555  ;;  %v1579_v61 = vrot.slane %v1560_v13, 4 }
 0x3b6   : > { %v1577_v12 = vrot.slane %v1556_v16, 4  ;;  %v1681_v51 = vpop.permute.xlu2 %1680 }
 0x3b7   : > { %v1694_v18 = vrot.slane %v1681_v51, 4 }
 0x3b8   : > { %v1594_v31 = vsel %vm279_vm0, %v1577_v12, %v1578_v32  ;;  %v1679_v22 = vpop.permute.xlu1 %1678 }
 0x3b9   : > { %v1595_v38 = vsel %vm1584_vm12, %v1556_v16, %v1594_v31  ;;  %v1693_v63 = vrot.slane %v1679_v22, 4  ;;  %v1703_v5 = vsel %vm1700_vm13, %v1694_v18, %v1681_v51 }
 0x3ba   : > { %v3721_v44 = vadd.f32 %v1595_v38, %v3542_v56  ;;  %v1730_v56 = vmul.f32 %v1694_v18, %v3548_v24  ;;  %v1729_v39 = vmul.f32 %v1703_v5, %v3538_v34 }
 0x3bb   : > { %v1702_v1 = vsel %vm1700_vm13, %v1693_v63, %v1679_v22  ;;  %v1728_v49 = vmul.f32 %v1693_v63, %v3548_v24 }
 0x3bc   : > { %v1727_v17 = vmul.f32 %v1702_v1, %v3538_v34 }
 0x3bd   : > { %v1562_v2 = vpop.permute.xlu0 %1561 }
 0x3be   : > { %v1580_v0 = vrot.slane %v1562_v2, 4  ;;  %1761 = vrot.lane.b32.xlu0 %v1727_v17, %s2525_s29  ;;  %v1687_v37 = vpop.permute.xlu2 %1686 }
 0x3bf   : > { %v1697_v51 = vrot.slane %v1687_v37, 4 }
 0x3c0   : > { %v1596_v36 = vsel %vm279_vm0, %v1579_v61, %v1580_v0  ;;  %v1685_v47 = vpop.permute.xlu1 %1684 }
 0x3c1   : > { %v1597_v42 = vsel %vm1584_vm12, %v1560_v13, %v1596_v36  ;;  %v1696_v40 = vrot.slane %v1685_v47, 4  ;;  %v1706_v61 = vsel %vm1700_vm13, %v1697_v51, %v1687_v37  ;;  %v1736_v18 = vmul.f32 %v1697_v51, %v3548_v24 }
 0x3c2   : > { %v3729_v26 = vadd.f32 %v1597_v42, %v3554_v55  ;;  %v1735_v42 = vmul.f32 %v1706_v61, %v3538_v34 }
 0x3c3   : > { %v1734_v7 = vmul.f32 %v1696_v40, %v3548_v24  ;;  %v1705_v31 = vsel %vm1700_vm13, %v1696_v40, %v1685_v47 }
 0x3c4   : > { %v1733_v38 = vmul.f32 %v1705_v31, %v3538_v34 }
 0x3c5   : > { %v1677_v3 = vpop.permute.xlu0 %1676 }
 0x3c6   : > { %v1692_v30 = vrot.slane %v1677_v3, 4  ;;  %1767 = vrot.lane.b32.xlu0 %v1730_v56, %s2525_s29  ;;  %v1893_v62 = vpop.permute.xlu2 %1892 }
 0x3c7   : > { %v1906_v14 = vrot.slane %v1893_v62, 4 }
 0x3c8   : > { %v1701_v41 = vsel %vm1700_vm13, %v1692_v30, %v1677_v3  ;;  %v1726_v59 = vmul.f32 %v1692_v30, %v3548_v24  ;;  %v1891_v20 = vpop.permute.xlu1 %1890 }
 0x3c9   : > { %v1725_v29 = vmul.f32 %v1701_v41, %v3538_v34  ;;  %v1905_v27 = vrot.slane %v1891_v20, 4  ;;  %v1915_v45 = vsel %vm1912_vm14, %v1906_v14, %v1893_v62  ;;  %v1942_v21 = vmul.f32 %v1906_v14, %v3747_v60 }
 0x3ca   : > { %1759 = vrot.lane.b32.xlu2 %v1726_v59, %s2525_s29  ;;  %v1941_v16 = vmul.f32 %v1915_v45, %v3538_v34 }
 0x3cb   : > { %1757 = vrot.lane.b32.xlu1 %v1725_v29, %s2525_s29  ;;  %v1940_v19 = vmul.f32 %v1905_v27, %v3747_v60  ;;  %v1914_v35 = vsel %vm1912_vm14, %v1905_v27, %v1891_v20 }
 0x3cc   : > { %v1939_v11 = vmul.f32 %v1914_v35, %v3538_v34 }
 0x3cd   : > { %v1683_v55 = vpop.permute.xlu0 %1682 }
 0x3ce   : > { %v1695_v25 = vrot.slane %v1683_v55, 4  ;;  %v1897_v63 = vpop.permute.xlu2 %1896 }
 0x3cf   : > { %v1908_v17 = vrot.slane %v1897_v63, 4 }
 0x3d0   : > { %v1704_v9 = vsel %vm1700_vm13, %v1695_v25, %v1683_v55  ;;  %v1732_v6 = vmul.f32 %v1695_v25, %v3548_v24  ;;  %v1689_v33 = vpop.permute.xlu1 %1688 }
 0x3d1   : > { %v1731_v53 = vmul.f32 %v1704_v9, %v3538_v34  ;;  %v1698_v32 = vrot.slane %v1689_v33, 4  ;;  %v1946_v0 = vmul.f32 %v1908_v17, %v3747_v60  ;;  %v1917_v56 = vsel %vm1912_vm14, %v1908_v17, %v1897_v63 }
 0x3d2   : > { %1765 = vrot.lane.b32.xlu2 %v1729_v39, %s2525_s29  ;;  %v1945_v30 = vmul.f32 %v1917_v56, %v3538_v34 }
 0x3d3   : > { %1763 = vrot.lane.b32.xlu1 %v1728_v49, %s2525_s29  ;;  %1769 = vrot.lane.b32.xlu0 %v1731_v53, %s2525_s29  ;;  %v1707_v12 = vsel %vm1700_vm13, %v1698_v32, %v1689_v33  ;;  %v1738_v29 = vmul.f32 %v1698_v32, %v3548_v24 }
 0x3d4   : > { %v1737_v22 = vmul.f32 %v1707_v12, %v3538_v34 }
 0x3d5   : > { %v1889_v28 = vpop.permute.xlu0 %1888 }
 0x3d6   : > { %v1904_v50 = vrot.slane %v1889_v28, 4  ;;  %v1901_v59 = vpop.permute.xlu2 %1900 }
 0x3d7   : > { %v1910_v55 = vrot.slane %v1901_v59, 4 }
 0x3d8   : > { %v1913_v58 = vsel %vm1912_vm14, %v1904_v50, %v1889_v28  ;;  %v1938_v8 = vmul.f32 %v1904_v50, %v3747_v60  ;;  %v1899_v2 = vpop.permute.xlu1 %1898 }
 0x3d9   : > { %v1937_v13 = vmul.f32 %v1913_v58, %v3538_v34  ;;  %v1909_v36 = vrot.slane %v1899_v2, 4  ;;  %v1950_v9 = vmul.f32 %v1910_v55, %v3747_v60  ;;  %v1919_v49 = vsel %vm1912_vm14, %v1910_v55, %v1901_v59 }
 0x3da   : > { %1971 = vrot.lane.b32.xlu2 %v1938_v8, %s2526_s9  ;;  %v1949_v53 = vmul.f32 %v1919_v49, %v3538_v34 }
 0x3db   : > { %1969 = vrot.lane.b32.xlu1 %v1937_v13, %s2526_s9  ;;  %1975 = vrot.lane.b32.xlu0 %v1940_v19, %s2526_s9  ;;  %v1918_v3 = vsel %vm1912_vm14, %v1909_v36, %v1899_v2  ;;  %v1948_v28 = vmul.f32 %v1909_v36, %v3747_v60 }
 0x3dc   : > { %v1947_v47 = vmul.f32 %v1918_v3, %v3538_v34 }
 0x3dd   : > { %v1895_v46 = vpop.permute.xlu0 %1894 }
 0x3de   : > { %v1907_v52 = vrot.slane %v1895_v46, 4 }
 0x3e0   : > { %v1916_v23 = vsel %vm1912_vm14, %v1907_v52, %v1895_v46  ;;  %v1944_v1 = vmul.f32 %v1907_v52, %v3747_v60 }
 0x3e1   : > { %v1943_v57 = vmul.f32 %v1916_v23, %v3538_v34 }
 0x3e2   : > { %1973 = vrot.lane.b32.xlu2 %v1939_v11, %s2526_s9 }
 0x3e3   : > { %1771 = vrot.lane.b32.xlu1 %v1732_v6, %s2525_s29  ;;  %1981 = vrot.lane.b32.xlu0 %v1943_v57, %s2526_s9 }
 0x3e5   : > { %v1691_v41 = vpop.permute.xlu0 %1690 }
 0x3e6   : > { %v1699_v5 = vrot.slane %v1691_v41, 4 }
 0x3e8   : > { %v1708_v39 = vsel %vm1700_vm13, %v1699_v5, %v1691_v41  ;;  %v1740_v25 = vmul.f32 %v1699_v5, %v3548_v24 }
 0x3e9   : > { %v1739_v20 = vmul.f32 %v1708_v39, %v3538_v34 }
 0x3ea   : > { %1979 = vrot.lane.b32.xlu2 %v1942_v21, %s2526_s9 }
 0x3eb   : > { %1775 = vrot.lane.b32.xlu0 %v1734_v7, %s2525_s29  ;;  %1977 = vrot.lane.b32.xlu1 %v1941_v16, %s2526_s9 }
 0x3ed   : > { %v1903_v27 = vpop.permute.xlu0 %1902 }
 0x3ee   : > { %v1911_v24 = vrot.slane %v1903_v27, 4 }
 0x3f0   : > { %v1920_v37 = vsel %vm1912_vm14, %v1911_v24, %v1903_v27  ;;  %v1952_v50 = vmul.f32 %v1911_v24, %v3747_v60 }
 0x3f1   : > { %v1951_v19 = vmul.f32 %v1920_v37, %v3538_v34 }
 0x3f2   : > { %1773 = vrot.lane.b32.xlu2 %v1733_v38, %s2525_s29 }
 0x3f3   : > { %1781 = vrot.lane.b32.xlu0 %v1737_v22, %s2525_s29  ;;  %1983 = vrot.lane.b32.xlu1 %v1944_v1, %s2526_s9 }
 0x3fa   : > { %1779 = vrot.lane.b32.xlu2 %v1736_v18, %s2525_s29 }
 0x3fb   : > { %1777 = vrot.lane.b32.xlu1 %v1735_v42, %s2525_s29  ;;  %1987 = vrot.lane.b32.xlu0 %v1946_v0, %s2526_s9 }
 0x402   : > { %1985 = vrot.lane.b32.xlu2 %v1945_v30, %s2526_s9 }
 0x403   : > { %1783 = vrot.lane.b32.xlu1 %v1738_v29, %s2525_s29  ;;  %1989 = vrot.lane.b32.xlu0 %v1947_v47, %s2526_s9 }
 0x40a   : > { %1787 = vrot.lane.b32.xlu2 %v1740_v25, %s2525_s29 }
 0x40b   : > { %1785 = vrot.lane.b32.xlu1 %v1739_v20, %s2525_s29  ;;  %1995 = vrot.lane.b32.xlu0 %v1950_v9, %s2526_s9 }
 0x412   : > { %1993 = vrot.lane.b32.xlu2 %v1949_v53, %s2526_s9 }
 0x413   : > { %1991 = vrot.lane.b32.xlu1 %v1948_v28, %s2526_s9 }
 0x41a   : > { %1999 = vrot.lane.b32.xlu2 %v1952_v50, %s2526_s9 }
 0x41b   : > { %1997 = vrot.lane.b32.xlu1 %v1951_v19, %s2526_s9 }
 0x424   : > { %v1760_v58 = vpop.permute.xlu2 %1759 }
 0x425   : > { %v1790_v14 = vrot.slane %v1760_v58, 4 }
 0x42c   : > { %v1766_v8 = vpop.permute.xlu2 %1765 }
 0x42d   : > { %v1793_v3 = vrot.slane %v1766_v8, 4 }
 0x430   : > { %v1762_v13 = vpop.permute.xlu0 %1761 }
 0x431   : > { %v1791_v33 = vrot.slane %v1762_v13, 4 }
 0x434   : > { %v1972_v35 = vpop.permute.xlu2 %1971 }
 0x435   : > { %v2002_v16 = vrot.slane %v1972_v35, 4 }
 0x438   : > { %v1768_v46 = vpop.permute.xlu0 %1767 }
 0x439   : > { %v1794_v56 = vrot.slane %v1768_v46, 4 }
 0x43c   : > { %v1974_v52 = vpop.permute.xlu2 %1973 }
 0x43d   : > { %v1758_v11 = vpop.permute.xlu1 %1757  ;;  %v2003_v12 = vrot.slane %v1974_v52, 4 }
 0x43e   : > { %v1789_v6 = vrot.slane %v1758_v11, 4 }
 0x440   : > { %v1805_v60 = vsel %vm279_vm0, %v1789_v6, %v1790_v14 }
 0x441   : > { %v1807_v21 = vsel %vm1806_vm15, %v1758_v11, %v1805_v60 }
 0x442   : > { %v1830_v38 = vadd.f32 %v1807_v21, %v3696_v54  ;;  %v1810_v54 = vsel %vm279_vm0, %v1793_v3, %v1794_v56 }
 0x443   : > { %v1811_v47 = vsel %vm1806_vm15, %v1766_v8, %v1810_v54 }
 0x444   : > { %v1980_v34 = vpop.permute.xlu2 %1979  ;;  %v1832_v39 = vadd.f32 %v1811_v47, %v3706_v4 }
 0x445   : > { %v1764_v62 = vpop.permute.xlu1 %1763  ;;  %v1770_v23 = vpop.permute.xlu0 %1769  ;;  %v2006_v41 = vrot.slane %v1980_v34, 4 }
 0x446   : > { %v1792_v57 = vrot.slane %v1764_v62, 4  ;;  %v1795_v55 = vrot.slane %v1770_v23, 4 }
 0x448   : > { %v1808_v45 = vsel %vm279_vm0, %v1791_v33, %v1792_v57 }
 0x449   : > { %v1809_v40 = vsel %vm1806_vm15, %v1762_v13, %v1808_v45 }
 0x44a   : > { %v1831_v63 = vadd.f32 %v1809_v40, %v3691_v48 }
 0x44c   : > { %v1774_v18 = vpop.permute.xlu2 %1773 }
 0x44d   : > { %v1970_v32 = vpop.permute.xlu1 %1969  ;;  %v1976_v7 = vpop.permute.xlu0 %1975  ;;  %v1797_v19 = vrot.slane %v1774_v18, 4 }
 0x44e   : > { %v2001_v31 = vrot.slane %v1970_v32, 4  ;;  %v2004_v22 = vrot.slane %v1976_v7, 4 }
 0x450   : > { %v2017_v1 = vsel %vm279_vm0, %v2001_v31, %v2002_v16  ;;  %v2020_v51 = vsel %vm279_vm0, %v2003_v12, %v2004_v22 }
 0x451   : > { %v2019_v17 = vsel %vm2018_vm1, %v1970_v32, %v2017_v1  ;;  %v2021_v2 = vsel %vm2018_vm1, %v1974_v52, %v2020_v51 }
 0x452   : > { %v2042_v61 = vadd.f32 %v2019_v17, %v1830_v38  ;;  %v2043_v0 = vadd.f32 %v2021_v2, %v1831_v63 }
 0x454   : > { %2058 = vst [vmem:[#allocation1] ss:$2 sm:$0xff] %v2042_v61  ;;  %v3823_v59 = vpop.permute.xlu2 %1779  ;;  %v3849_v61 = vld [vmem:[%s3968_s2] sm:$0xff] }
 0x455   : > { %2062 = vst [vmem:[#allocation1 + $0x10] ss:$2 sm:$0xff] %v2043_v0  ;;  %v1772_v36 = vpop.permute.xlu1 %1771  ;;  %v1982_v42 = vpop.permute.xlu0 %1981  ;;  %v2217_v54 = vrot.slane %v3849_v61, 1  ;;  %v1800_v47 = vrot.slane %v3823_v59, 4 }
 0x456   : > { %v1796_v29 = vrot.slane %v1772_v36, 4  ;;  %v2007_v24 = vrot.slane %v1982_v42, 4 }
 0x458   : > { %v1812_v20 = vsel %vm279_vm0, %v1795_v55, %v1796_v29 }
 0x459   : > { %v1813_v53 = vsel %vm1806_vm15, %v1770_v23, %v1812_v20 }
 0x45a   : > { %v1833_v58 = vadd.f32 %v1813_v53, %v3711_v10 }
 0x45b   : > { %v2059_v21 = vld.sshfl [vmem:[#allocation1] sm:$0xff pattern:$0x75316420]  ;;  %v2060_v7 = vld.sshfl [vmem:[#allocation1 + $0x8] sm:$0xff pattern:$0x75316420] }
 0x45c   : > { %v1986_v8 = vpop.permute.xlu2 %1985  ;;  %v2063_v23 = vld.sshfl [vmem:[#allocation1 + $0x10] sm:$0xff pattern:$0x75316420]  ;;  %v2064_v6 = vld.sshfl [vmem:[#allocation1 + $0x18] sm:$0xff pattern:$0x75316420] }
 0x45d   : > { %v1776_v48 = vpop.permute.xlu0 %1775  ;;  %v1978_v30 = vpop.permute.xlu1 %1977  ;;  %v2009_v57 = vrot.slane %v1986_v8, 4  ;;  %v2115_v60 = vsel %vm279_vm0, %v2063_v23, 0.0  ;;  %v2122_v34 = vsel %vm279_vm0, %v2064_v6, 0.0  ;;  %v2101_v31 = vsel %vm279_vm0, %v2059_v21, 0.0 }
 0x45e   : > { %v2005_v5 = vrot.slane %v1978_v30, 4  ;;  %v1798_v37 = vrot.slane %v1776_v48, 4  ;;  %v2116_v16 = vrot.slane %v2115_v60, 4  ;;  %v2123_v12 = vrot.slane %v2122_v34, 4 }
 0x45f   : > { %v2108_v22 = vsel %vm279_vm0, %v2060_v7, 0.0  ;;  %v2102_v1 = vrot.slane %v2101_v31, 4 }
 0x460   : > { %v2022_v25 = vsel %vm279_vm0, %v2005_v5, %v2006_v41  ;;  %v1814_v35 = vsel %vm279_vm0, %v1797_v19, %v1798_v37  ;;  %v2117_v51 = vadd.f32 %v2116_v16, %v2115_v60  ;;  %v2124_v17 = vadd.f32 %v2123_v12, %v2122_v34 }
 0x461   : > { %v2023_v9 = vsel %vm2018_vm1, %v1978_v30, %v2022_v25  ;;  %v1815_v11 = vsel %vm1806_vm15, %v1774_v18, %v1814_v35  ;;  %v2109_v0 = vrot.slane %v2108_v22, 4  ;;  %v3854_v18 = vld [vmem:[%s3968_s2 + $0x8] sm:$0xff]  ;;  %v2103_v3 = vadd.f32 %v2102_v1, %v2101_v31 }
 0x462   : > { %v2044_v49 = vadd.f32 %v2023_v9, %v1832_v39  ;;  %v1834_v10 = vadd.f32 %v1815_v11, %v3701_v15  ;;  %v2118_v48 = vrot.slane %v2117_v51, 2  ;;  %v2125_v30 = vrot.slane %v2124_v17, 2 }
 0x463   : > { %v2110_v29 = vadd.f32 %v2109_v0, %v2108_v22  ;;  %v2218_v55 = vrot.slane %v3854_v18, 1  ;;  %v2104_v59 = vrot.slane %v2103_v3, 2 }
 0x464   : > { %2066 = vst [vmem:[#allocation1 + $0x20] ss:$2 sm:$0xff] %v2044_v49  ;;  %v1788_v40 = vpop.permute.xlu2 %1787 }
 0x465   : > { %v1782_v27 = vpop.permute.xlu0 %1781  ;;  %v1984_v28 = vpop.permute.xlu1 %1983  ;;  %v1804_v39 = vrot.slane %v1788_v40, 4  ;;  %v2111_v11 = vrot.slane %v2110_v29, 2  ;;  %v2105_v60 = vadd.f32 %v2104_v59, %v2103_v3  ;;  %v2219_v40 = vrot.slane %v3849_v61, 2 }
 0x466   : > { %v2008_v50 = vrot.slane %v1984_v28, 4  ;;  %v1801_v2 = vrot.slane %v1782_v27, 4 }
 0x468   : > { %v2024_v4 = vsel %vm279_vm0, %v2007_v24, %v2008_v50 }
 0x469   : > { %v2025_v13 = vsel %vm2018_vm1, %v1982_v42, %v2024_v4 }
 0x46a   : > { %v2045_v46 = vadd.f32 %v2025_v13, %v1833_v58  ;;  %v2119_v58 = vadd.f32 %v2118_v48, %v2117_v51 }
 0x46b   : > { %v2067_v36 = vld.sshfl [vmem:[#allocation1 + $0x20] sm:$0xff pattern:$0x75316420]  ;;  %v2068_v56 = vld.sshfl [vmem:[#allocation1 + $0x28] sm:$0xff pattern:$0x75316420] }
 0x46c   : > { %2070 = vst [vmem:[#allocation1 + $0x30] ss:$2 sm:$0xff] %v2045_v46  ;;  %v1994_v41 = vpop.permute.xlu2 %1993  ;;  %v2129_v5 = vsel %vm279_vm0, %v2067_v36, 0.0  ;;  %v2136_v53 = vsel %vm279_vm0, %v2068_v56, 0.0  ;;  %v2120_v34 = vrot.slane %v2119_v58, 1 }
 0x46d   : > { %v3835_v52 = vpop.permute.xlu1 %1777  ;;  %v1988_v62 = vpop.permute.xlu0 %1987  ;;  %v2013_v25 = vrot.slane %v1994_v41, 4  ;;  %v2130_v19 = vrot.slane %v2129_v5, 4 }
 0x46e   : > { %v2010_v14 = vrot.slane %v1988_v62, 4  ;;  %v1799_v28 = vrot.slane %v3835_v52, 4  ;;  %v2121_v0 = vadd.f32 %v2120_v34, %v2119_v58 }
 0x46f   : > { %v2131_v7 = vadd.f32 %v2130_v19, %v2129_v5 }
 0x470   : > { %v2026_v33 = vsel %vm279_vm0, %v2009_v57, %v2010_v14  ;;  %v1816_v57 = vsel %vm279_vm0, %v1799_v28, %v1800_v47 }
 0x471   : > { %v2027_v45 = vsel %vm2018_vm1, %v1986_v8, %v2026_v33  ;;  %v2126_v8 = vadd.f32 %v2125_v30, %v2124_v17  ;;  %v1817_v12 = vsel %vm1806_vm15, %v3835_v52, %v1816_v57  ;;  %v2132_v30 = vrot.slane %v2131_v7, 2 }
 0x472   : > { %v2046_v32 = vadd.f32 %v2027_v45, %v1834_v10  ;;  %v1835_v56 = vadd.f32 %v1817_v12, %v3721_v44  ;;  %v3890_v44 = vadd.f32 %v2217_v54, %v2121_v0 }
 0x473   : > { %v2071_v50 = vld.sshfl [vmem:[#allocation1 + $0x30] sm:$0xff pattern:$0x75316420]  ;;  %v2072_v46 = vld.sshfl [vmem:[#allocation1 + $0x38] sm:$0xff pattern:$0x75316420]  ;;  %v2133_v58 = vadd.f32 %v2132_v30, %v2131_v7 }
 0x474   : > { %2073 = vst [vmem:[#allocation1] ss:$2 sm:$0xff] %v2046_v32  ;;  %v2143_v6 = vsel %vm279_vm0, %v2071_v50, 0.0  ;;  %v2127_v45 = vrot.slane %v2126_v8, 1  ;;  %v2150_v21 = vsel %vm279_vm0, %v2072_v46, 0.0  ;;  %v2220_v32 = vrot.slane %v3854_v18, 2 }
 0x475   : > { %v1784_v15 = vpop.permute.xlu1 %1783  ;;  %v3844_v38 = vpop.permute.xlu0 %1989  ;;  %v2144_v31 = vrot.slane %v2143_v6, 4  ;;  %v2151_v17 = vrot.slane %v2150_v21, 4 }
 0x476   : > { %v1802_v63 = vrot.slane %v1784_v15, 4  ;;  %v2011_v1 = vrot.slane %v3844_v38, 4  ;;  %v2128_v36 = vadd.f32 %v2127_v45, %v2126_v8 }
 0x478   : > { %v1818_v42 = vsel %vm279_vm0, %v1801_v2, %v1802_v63  ;;  %v2112_v63 = vadd.f32 %v2111_v11, %v2110_v29  ;;  %v2106_v2 = vrot.slane %v2105_v60, 1  ;;  %v2145_v29 = vadd.f32 %v2144_v31, %v2143_v6 }
 0x479   : > { %v1819_v9 = vsel %vm1806_vm15, %v1782_v27, %v1818_v42  ;;  %v2137_v27 = vrot.slane %v2136_v53, 4  ;;  %v2221_v42 = vrot.slane %v3849_v61, 3  ;;  %v2279_v11 = vrot.slane %v3890_v44, 7 }
 0x47a   : > { %v1836_v4 = vadd.f32 %v1819_v9, %v3729_v26  ;;  %v2113_v5 = vrot.slane %v2112_v63, 1  ;;  %v2222_v9 = vrot.slane %v3854_v18, 3 }
 0x47b   : > { %v2074_v26 = vld.sshfl [vmem:[#allocation1] sm:$0xff pattern:$0x75316420]  ;;  %v2075_v33 = vld.sshfl [vmem:[#allocation1 + $0x8] sm:$0xff pattern:$0x75316420]  ;;  %v2138_v16 = vadd.f32 %v2137_v27, %v2136_v53  ;;  %v3894_v53 = vadd.f32 %v2218_v55, %v2128_v36 }
 0x47c   : > { %v2157_v22 = vsel %vm279_vm0, %v2074_v26, 0.0  ;;  %v2164_v15 = vsel %vm279_vm0, %v2075_v33, 0.0  ;;  %v2114_v55 = vadd.f32 %v2113_v5, %v2112_v63  ;;  %v2134_v33 = vrot.slane %v2133_v58, 1 }
 0x47d   : > { %v1786_v20 = vpop.permute.xlu1 %1785  ;;  %v1996_v49 = vpop.permute.xlu0 %1995  ;;  %v2158_v3 = vrot.slane %v2157_v22, 4  ;;  %v2165_v48 = vrot.slane %v2164_v15, 4  ;;  %v2139_v47 = vrot.slane %v2138_v16, 2  ;;  %v2300_v6 = vrot.slane %v3894_v53, 7 }
 0x47e   : > { %v1803_v24 = vrot.slane %v1786_v20, 4  ;;  %v2014_v37 = vrot.slane %v1996_v49, 4  ;;  %v2107_v49 = vadd.f32 %v2106_v2, %v2105_v60  ;;  %v3909_v31 = vadd.f32 %v3854_v18, %v2114_v55 }
 0x47f   : > { %v2140_v8 = vadd.f32 %v2139_v47, %v2138_v16  ;;  %v2226_v2 = vrot.slane %v3854_v18, 5  ;;  %v2135_v30 = vadd.f32 %v2134_v33, %v2133_v58  ;;  %v2227_v5 = vrot.slane %v3849_v61, 6 }
 0x480   : > { %v1820_v13 = vsel %vm279_vm0, %v1803_v24, %v1804_v39  ;;  %v2030_v35 = vsel %vm279_vm0, %v2013_v25, %v2014_v37  ;;  %v2000_v39 = vpop.permute.xlu2 %1999  ;;  %v2166_v37 = vadd.f32 %v2165_v48, %v2164_v15 }
 0x481   : > { %v1821_v62 = vsel %vm1806_vm15, %v1786_v20, %v1820_v13  ;;  %v2031_v23 = vsel %vm2018_vm1, %v1994_v41, %v2030_v35  ;;  %v2152_v20 = vadd.f32 %v2151_v17, %v2150_v21  ;;  %v2016_v19 = vrot.slane %v2000_v39, 4 }
 0x482   : > { %v3872_v14 = vadd.f32 %v1821_v62, %v3716_v43  ;;  %v2048_v10 = vadd.f32 %v2031_v23, %v1836_v4  ;;  %v2146_v13 = vrot.slane %v2145_v29, 2  ;;  %v2223_v62 = vrot.slane %v3849_v61, 4 }
 0x483   : > { %v2153_v35 = vrot.slane %v2152_v20, 2  ;;  %v2224_v23 = vrot.slane %v3854_v18, 4  ;;  %v2167_v26 = vrot.slane %v2166_v37, 2  ;;  %v2141_v60 = vrot.slane %v2140_v8, 1 }
 0x484   : > { %2079 = vst [vmem:[#allocation1 + $0x20] ss:$2 sm:$0xff] %v2048_v10  ;;  %v2147_v45 = vadd.f32 %v2146_v13, %v2145_v29  ;;  %v2228_v39 = vrot.slane %v3854_v18, 6  ;;  %v2251_v58 = vadd.f32 %v2219_v40, %v2135_v30 }
 0x485   : > { %v1992_v43 = vpop.permute.xlu1 %1991  ;;  %v2154_v7 = vadd.f32 %v2153_v35, %v2152_v20  ;;  %v2142_v47 = vadd.f32 %v2141_v60, %v2140_v8 }
 0x486   : > { %v2012_v51 = vrot.slane %v1992_v43, 4  ;;  %v3906_v43 = vadd.f32 %v3849_v61, %v2107_v49  ;;  %v2229_v49 = vrot.slane %v3849_v61, 7 }
 0x487   : > { %v2252_v8 = vadd.f32 %v2220_v32, %v2142_v47 }
 0x488   : > { %v2028_v52 = vsel %vm279_vm0, %v2011_v1, %v2012_v51  ;;  %v2168_v1 = vadd.f32 %v2167_v26, %v2166_v37 }
 0x489   : > { %v2029_v41 = vsel %vm2018_vm1, %v3844_v38, %v2028_v52  ;;  %v2159_v38 = vadd.f32 %v2158_v3, %v2157_v22  ;;  %v2155_v52 = vrot.slane %v2154_v7, 1 }
 0x48a   : > { %v2047_v25 = vadd.f32 %v2029_v41, %v1835_v56  ;;  %v2148_v56 = vrot.slane %v2147_v45, 1  ;;  %v2169_v20 = vrot.slane %v2168_v1, 1 }
 0x48b   : > { %v2080_v28 = vld.sshfl [vmem:[#allocation1 + $0x20] sm:$0xff pattern:$0x75316420]  ;;  %v2081_v24 = vld.sshfl [vmem:[#allocation1 + $0x28] sm:$0xff pattern:$0x75316420] }
 0x48c   : > { %2076 = vst [vmem:[#allocation1 + $0x10] ss:$2 sm:$0xff] %v2047_v25  ;;  %v2185_v50 = vsel %vm279_vm0, %v2080_v28, 0.0  ;;  %v2192_v59 = vsel %vm279_vm0, %v2081_v24, 0.0  ;;  %v2160_v10 = vrot.slane %v2159_v38, 2  ;;  %v2230_v28 = vrot.slane %v3854_v18, 7 }
 0x48d   : > { %v1998_v4 = vpop.permute.xlu1 %1997  ;;  %v2186_v27 = vrot.slane %v2185_v50, 4  ;;  %v2193_v46 = vrot.slane %v2192_v59, 4  ;;  %v2149_v37 = vadd.f32 %v2148_v56, %v2147_v45 }
 0x48e   : > { %v2015_v54 = vrot.slane %v1998_v4, 4  ;;  %v2161_v63 = vadd.f32 %v2160_v10, %v2159_v38 }
 0x48f   : > { %v2187_v16 = vadd.f32 %v2186_v27, %v2185_v50  ;;  %v2194_v12 = vadd.f32 %v2193_v46, %v2192_v59  ;;  %v2156_v50 = vadd.f32 %v2155_v52, %v2154_v7  ;;  %v2170_v46 = vadd.f32 %v2169_v20, %v2168_v1 }
 0x490   : > { %v2032_v57 = vsel %vm279_vm0, %v2015_v54, %v2016_v19  ;;  %v2162_v25 = vrot.slane %v2161_v63, 1  ;;  %v2253_v32 = vadd.f32 %v2221_v42, %v2149_v37  ;;  %v2282_v42 = vrot.slane %v2251_v58, 6 }
 0x491   : > { %v2033_v34 = vsel %vm2018_vm1, %v1998_v4, %v2032_v57  ;;  %v2188_v3 = vrot.slane %v2187_v16, 2  ;;  %v2195_v48 = vrot.slane %v2194_v12, 2  ;;  %v2254_v45 = vadd.f32 %v2222_v9, %v2156_v50 }
 0x492   : > { %v2049_v21 = vadd.f32 %v2033_v34, %v3872_v14  ;;  %v2225_v14 = vrot.slane %v3849_v61, 5  ;;  %v2163_v27 = vadd.f32 %v2162_v25, %v2161_v63 }
 0x493   : > { %v2077_v22 = vld.sshfl [vmem:[#allocation1 + $0x10] sm:$0xff pattern:$0x75316420]  ;;  %v2078_v15 = vld.sshfl [vmem:[#allocation1 + $0x18] sm:$0xff pattern:$0x75316420]  ;;  %v2189_v59 = vadd.f32 %v2188_v3, %v2187_v16  ;;  %v2196_v19 = vadd.f32 %v2195_v48, %v2194_v12 }
 0x494   : > { %2082 = vst [vmem:[#allocation1 + $0x30] ss:$2 sm:$0xff] %v2049_v21  ;;  %v2171_v51 = vsel %vm279_vm0, %v2077_v22, 0.0  ;;  %v2178_v17 = vsel %vm279_vm0, %v2078_v15, 0.0  ;;  %v2255_v22 = vadd.f32 %v2223_v62, %v2163_v27  ;;  %v2256_v15 = vadd.f32 %v2224_v23, %v2170_v46 }
 0x495   : > { %v2172_v0 = vrot.slane %v2171_v51, 4  ;;  %v2179_v36 = vrot.slane %v2178_v17, 4  ;;  %v2190_v40 = vrot.slane %v2189_v59, 1  ;;  %v2197_v34 = vrot.slane %v2196_v19, 1 }
 0x496   : > { %v2285_v3 = vrot.slane %v2253_v32, 5  ;;  %v2304_v48 = vrot.slane %v2254_v45, 5  ;;  %v2281_v62 = vsel %vm2280_vm2, %v2279_v11, %v3906_v43  ;;  %v2288_v30 = vrot.slane %v2255_v22, 4 }
 0x497   : > { %v2173_v41 = vadd.f32 %v2172_v0, %v2171_v51  ;;  %v2180_v29 = vadd.f32 %v2179_v36, %v2178_v17  ;;  %v2302_v0 = vrot.slane %v2252_v8, 6  ;;  %v2191_v36 = vadd.f32 %v2190_v40, %v2189_v59 }
 0x498   : > { %v2198_v9 = vadd.f32 %v2197_v34, %v2196_v19  ;;  %v2301_v23 = vsel %vm2280_vm2, %v2300_v6, %v3909_v31 }
 0x499   : > { %v2174_v24 = vrot.slane %v2173_v41, 2  ;;  %v2181_v38 = vrot.slane %v2180_v29, 2  ;;  %v2259_v25 = vadd.f32 %v2227_v5, %v2191_v36  ;;  %v2303_v44 = vsel %vm2283_vm3, %v2302_v0, %v2301_v23 }
 0x49a   : > { %v2260_v20 = vadd.f32 %v2228_v39, %v2198_v9  ;;  %v2305_v37 = vsel %vm2286_vm4, %v2304_v48, %v2303_v44 }
 0x49b   : > { %v2083_v4 = vld.sshfl [vmem:[#allocation1 + $0x30] sm:$0xff pattern:$0x75316420]  ;;  %v2084_v13 = vld.sshfl [vmem:[#allocation1 + $0x38] sm:$0xff pattern:$0x75316420]  ;;  %v2175_v54 = vadd.f32 %v2174_v24, %v2173_v41  ;;  %v2182_v35 = vadd.f32 %v2181_v38, %v2180_v29  ;;  %v2284_v24 = vsel %vm2283_vm3, %v2282_v42, %v2281_v62 }
 0x49c   : > { %v2199_v55 = vsel %vm279_vm0, %v2083_v4, 0.0  ;;  %v2206_v57 = vsel %vm279_vm0, %v2084_v13, 0.0  ;;  %v2287_v43 = vsel %vm2286_vm4, %v2285_v3, %v2284_v24  ;;  %vm2295_vm0 = vcmask 1046534  }
 0x49d   : > { %v2176_v10 = vrot.slane %v2175_v54, 1  ;;  %v2183_v26 = vrot.slane %v2182_v35, 1  ;;  %v2200_v33 = vrot.slane %v2199_v55, 4  ;;  %v2207_v60 = vrot.slane %v2206_v57, 4 }
 0x49e   : > { %v2290_v53 = vsel %vm2289_vm5, %v2288_v30, %v2287_v43  ;;  %v2294_v59 = vrot.slane %v2259_v25, 2  ;;  %v2310_v19 = vrot.slane %v2260_v20, 2 }
 0x49f   : > { %v2177_v21 = vadd.f32 %v2176_v10, %v2175_v54  ;;  %v2184_v7 = vadd.f32 %v2183_v26, %v2182_v35  ;;  %v2201_v16 = vadd.f32 %v2200_v33, %v2199_v55  ;;  %v2208_v12 = vadd.f32 %v2207_v60, %v2206_v57 }
 0x4a1   : > { %v2202_v63 = vrot.slane %v2201_v16, 2  ;;  %v2209_v1 = vrot.slane %v2208_v12, 2  ;;  %v2257_v51 = vadd.f32 %v2225_v14, %v2177_v21  ;;  %v2258_v17 = vadd.f32 %v2226_v2, %v2184_v7 }
 0x4a2   : > { %v2306_v14 = vrot.slane %v2256_v15, 4 }
 0x4a3   : > { %v2203_v56 = vadd.f32 %v2202_v63, %v2201_v16  ;;  %v2210_v52 = vadd.f32 %v2209_v1, %v2208_v12  ;;  %v2291_v41 = vrot.slane %v2257_v51, 3  ;;  %v2308_v29 = vrot.slane %v2258_v17, 3 }
 0x4a4   : > { %v2307_v6 = vsel %vm2289_vm5, %v2306_v14, %v2305_v37 }
 0x4a5   : > { %v2204_v2 = vrot.slane %v2203_v56, 1  ;;  %v2211_v47 = vrot.slane %v2210_v52, 1  ;;  %v2293_v39 = vsel %vm2292_vm6, %v2291_v41, %v2290_v53  ;;  %v2309_v50 = vsel %vm2292_vm6, %v2308_v29, %v2307_v6 }
 0x4a6   : > { %v2296_v4 = vsel %vm2295_vm0, %v2294_v59, %v2293_v39  ;;  %v2311_v13 = vsel %vm2295_vm0, %v2310_v19, %v2309_v50 }
 0x4a7   : > { %v2205_v38 = vadd.f32 %v2204_v2, %v2203_v56  ;;  %v2212_v11 = vadd.f32 %v2211_v47, %v2210_v52 }
 0x4a9   : > { %v2261_v31 = vadd.f32 %v2229_v49, %v2205_v38  ;;  %v2262_v5 = vadd.f32 %v2230_v28, %v2212_v11 }
 0x4ab   : > { %v2297_v58 = vrot.slane %v2261_v31, 1  ;;  %v2312_v8 = vrot.slane %v2262_v5, 1 }
 0x4ad   : > { %v2299_v61 = vsel %vm2298_vm7, %v2297_v58, %v2296_v4  ;;  %v2313_v49 = vsel %vm2298_vm7, %v2312_v8, %v2311_v13 }
 0x4ae   : > { %2316 = vst [vmem:[%s237_s24] sm:$0xff] %v2299_v61 }
 0x4af   : > { %2317 = vst [vmem:[%s237_s24 + $0x8] sm:$0xff] %v2313_v49 }
 0x4b0 PF: > { %s13_s14 = sadd.s32 1, %s2509_s14   ;;  %s3970_s12 = smov %s2505_s13 }
 0x4b1   : > { %p10_p5 = scmp.ge.s32.totalorder %s13_s14, 4   ;;  %s3971_s13 = smov %s3973_s15 }
 0x4b3   :  { %12 = sbr.rel (!%p10_p5) target bundleno = 2 (0x2), region = 87 }

</bundles_post_ra>
